<compile_context>
chip_gen: v7x
topology: tpu7x:2x2x1
jax: 0.10.0
libtpu: 0.0.40
codegen_flags: <defaults>
</compile_context>

<pallas_src>
import functools

import numpy as np
import jax
import jax.numpy as jnp
from jax.experimental import pallas as pl
from jax.experimental.pallas import tpu as pltpu

TOKEN_SELF_ATTN_VALUE = -5e4                                  # local_attention constant
MASK_VALUE = -float(np.finfo(np.float32).max)                 # -torch.finfo(f32).max

# Numerics policy: exact (erf) GELU matches the PyTorch reference; set True to
# trade exactness for the EUP tanh path if the FFN bundle is VALU-bound.
GELU_USE_TANH_APPROX = False


# --------------------------------------------------------------------------
# capability probes / hardware queries (prime OUTSIDE jit -- see make_forward)
# --------------------------------------------------------------------------
_ERF_OK = None
_BUFFERED_OK = None


def _erf_supported():
    """Exact-GELU capability probe (erf lowering); falls back to tanh approx."""
    global _ERF_OK
    if _ERF_OK is None:
        def _k(x_ref, o_ref):
            o_ref[...] = jax.lax.erf(x_ref[...])
        try:
            pl.pallas_call(
                _k, out_shape=jax.ShapeDtypeStruct((8, 128), jnp.float32)
            )(jnp.zeros((8, 128), jnp.float32)).block_until_ready()
            _ERF_OK = True
        except Exception:
            # TODO(synk): erf not lowerable on this backend -> tanh-approx GELU.
            _ERF_OK = False
    return _ERF_OK


def _buffered_supported():
    """Probe pipeline_mode=pl.Buffered(1) (single-buffered invariant weights)."""
    global _BUFFERED_OK
    if _BUFFERED_OK is None:
        def _k(x_ref, w_ref, o_ref):
            o_ref[...] = x_ref[...] + w_ref[...]
        try:
            w_spec = pl.BlockSpec((8, 128), lambda i: (0, 0),
                                  pipeline_mode=pl.Buffered(1))
            pl.pallas_call(
                _k,
                out_shape=jax.ShapeDtypeStruct((8, 128), jnp.float32),
                grid=(1,),
                in_specs=[pl.BlockSpec((8, 128), lambda i: (0, 0)), w_spec],
                out_specs=pl.BlockSpec((8, 128), lambda i: (0, 0)),
            )(jnp.zeros((8, 128), jnp.float32),
              jnp.zeros((8, 128), jnp.float32)).block_until_ready()
            _BUFFERED_OK = True
        except Exception:
            _BUFFERED_OK = False
    return _BUFFERED_OK


@functools.lru_cache(maxsize=None)
def _vmem_limit_bytes():
    """Generation-aware VMEM budget: ~96 MiB on v5e/v6e (128 MiB physical),
    ~48 MiB on v7x (64 MiB physical per TC)."""
    try:
        cap = int(pltpu.get_tpu_info().vmem_capacity_bytes)
    except Exception:
        cap = 64 * 1024 * 1024
    return max(int(cap * 0.75), 32 * 1024 * 1024)


def _cost_estimate(flops, transcendentals, bytes_accessed):
    try:
        return pl.CostEstimate(flops=int(flops),
                               transcendentals=int(transcendentals),
                               bytes_accessed=int(bytes_accessed))
    except Exception:
        return None


def _weight_blockspec(shape):
    """Resident (constant index_map) weight spec; single-buffered when supported."""
    idx = lambda i: (0,) * len(shape)
    if _buffered_supported():
        return pl.BlockSpec(shape, idx, pipeline_mode=pl.Buffered(1))
    return pl.BlockSpec(shape, idx)


# --------------------------------------------------------------------------
# tile-size selection from the VMEM budget
# --------------------------------------------------------------------------
def _pick_row_tile(bn, D, H, budget, n_ffn):
    """Largest row tile dividing bn whose working set fits the VMEM budget."""
    wbuf = 1 if _buffered_supported() else 2
    resident = wbuf * n_ffn * (2 * (D * H + H * D) + 4 * (H + D))  # bf16 W + f32 b
    avail = max(budget - resident, 0)
    fallback = None
    for tm in (512, 256, 128, 64, 32, 16, 8):
        if bn % tm:
            continue
        fallback = tm  # smallest divisor seen so far (list is descending)
        # double-buffered f32 in/out rows + f32 hidden + bf16 operand copies
        need = tm * (2 * 2 * D * 4 + 2 * D * 4 + n_ffn * H * 4 + 2 * (D + H))
        if need <= avail:
            return tm
    if fallback is not None:
        return fallback
    # TODO(synk): bn not 8-divisible -> full-array block (legal, full-dim
    # exception); pad rows instead for large unaligned B*N.
    return bn


def _pick_windows_per_step(nw, B, W, D, budget):
    """Largest kw dividing nw that fits VMEM while keeping >= ~8 grid steps."""
    def fits(kw):
        io = 2 * 2 * kw * W * D * 4 + 2 * W * D * 4          # dbl-buffered in/out + prev
        inter = kw * (4 * W * W * 4 + 8 * W * D * 4)          # sims/exp + q/k/v copies
        return io + inter <= budget
    divisors = [d for d in range(nw, 0, -1) if nw % d == 0 and fits(d)]
    if not divisors:
        return 1
    for d in divisors:                                        # descending -> largest first
        if B * (nw // d) >= 8:
            return d
    return 1                                                  # tiny problem: maximize steps


# --------------------------------------------------------------------------
# FeedForward kernel:  x -> (for each weight set)  x = GELU(x@W1+b1)@W2 + b2 + x
# Handles 1 weight set (single FFN+residual) or 2 (fused back-to-back FFNs of
# adjacent layers -- saves a full HBM round trip of the activations).
# --------------------------------------------------------------------------
def _ffn_kernel(x_ref, *refs, n_ffn, exact_gelu):
    o_ref = refs[-1]
    x = x_ref[...]                                            # (tm, D) f32; residual too
    for s in range(n_ffn):
        w1_ref, b1_ref, w2_ref, b2_ref = refs[4 * s:4 * s + 4]
        # bf16 MXU operands, f32 accumulation
        h = jnp.dot(x.astype(jnp.bfloat16), w1_ref[...],
                    preferred_element_type=jnp.float32) + b1_ref[...]
        if exact_gelu:
            h = 0.5 * h * (1.0 + jax.lax.erf(h * np.float32(1.0 / np.sqrt(2.0))))
        else:
            h = jax.nn.gelu(h, approximate=True)
        # TODO(synk): FeedForward dropout (p=0.1) omitted -- eval/inference semantics.
        y = jnp.dot(h.astype(jnp.bfloat16), w2_ref[...],
                    preferred_element_type=jnp.float32) + b2_ref[...]
        x = y + x                                             # fused residual add
    o_ref[...] = x.astype(o_ref.dtype)


def feed_forward_residual(x, plist, *, exact_gelu):
    """y = FFN_k(...FFN_1(x)+x...)+...  for 1 or 2 weight sets; row-tiled,
    pipelined activations, weights resident (single-buffered) in VMEM."""
    B, N, D = x.shape
    H = plist[0]["w1"].shape[1]
    BN = B * N
    n_ffn = len(plist)
    vmem = _vmem_limit_bytes()
    tm = _pick_row_tile(BN, D, H, int(vmem * 0.85), n_ffn)
    xf = x.reshape(BN, D)

    weight_args, weight_specs = [], []
    for p in plist:
        weight_args += [p["w1"], p["b1"], p["w2"], p["b2"]]
        weight_specs += [_weight_blockspec((D, H)), _weight_blockspec((1, H)),
                         _weight_blockspec((H, D)), _weight_blockspec((1, D))]

    kernel = functools.partial(_ffn_kernel, n_ffn=n_ffn, exact_gelu=exact_gelu)
    cost = _cost_estimate(
        flops=n_ffn * 4 * BN * D * H,
        transcendentals=n_ffn * BN * H,
        bytes_accessed=2 * BN * D * 4 + n_ffn * (4 * D * H + 4 * (H + D)))

    out = pl.pallas_call(
        kernel,
        out_shape=jax.ShapeDtypeStruct((BN, D), x.dtype),
        grid=(BN // tm,),
        in_specs=[pl.BlockSpec((tm, D), lambda i: (i, 0))] + weight_specs,
        out_specs=pl.BlockSpec((tm, D), lambda i: (i, 0)),
        compiler_params=pltpu.CompilerParams(
            dimension_semantics=("parallel",),                # 2-TC sharding on v7x
            vmem_limit_bytes=vmem),
        cost_estimate=cost,
    )(xf, *weight_args)
    return out.reshape(B, N, D)


def _can_fuse_two_ffn(D, H):
    """Can two weight sets stay resident in VMEM simultaneously?"""
    wbuf = 1 if _buffered_supported() else 2
    resident = 2 * wbuf * (2 * (D * H + H * D) + 4 * (H + D))
    return resident <= int(_vmem_limit_bytes() * 0.5)


# --------------------------------------------------------------------------
# LocalAttention constants (cached per (N, D, window_size))
# --------------------------------------------------------------------------
@functools.lru_cache(maxsize=None)
def _attn_consts(N, D, W):
    assert N % W == 0, "sequence length must be divisible by window size"
    assert D % 2 == 0, "rotary embedding requires an even model dim"
    nw, J = N // W, 2 * W
    # SinusoidalEmbeddings over the looked-around key length J; the torch code
    # uses cat((freqs, freqs), -1) so both feature halves share the same table.
    inv_freq = 1.0 / (10000.0 ** (np.arange(0, D, 2, dtype=np.float32) / np.float32(D)))
    t = np.arange(J, dtype=np.float32)
    freqs = np.outer(t, inv_freq)                               # (J, D/2)
    cos, sin = np.cos(freqs).astype(np.float32), np.sin(freqs).astype(np.float32)
    cos_lo, sin_lo = cos[:W], sin[:W]        # rotary positions of backward-window keys
    cos_hi, sin_hi = cos[W:], sin[W:]        # rotary positions of q and current-window keys
    # additive bias inside the current window: causal -> -f32max, self -> -5e4
    ii = np.arange(W)[:, None]
    jj = np.arange(W)[None, :]
    bias_cur = np.where(jj > ii, MASK_VALUE,
                        np.where(jj == ii, TOKEN_SELF_ATTN_VALUE, 0.0)).astype(np.float32)
    # additive bias for the backward-window half: only window 0 has no backward context
    prev_bias = np.zeros((nw, 1, 1), np.float32)
    prev_bias[0, 0, 0] = MASK_VALUE
    return tuple(jnp.asarray(a) for a in
                 (cos_hi, sin_hi, cos_lo, sin_lo, bias_cur, prev_bias))


# --------------------------------------------------------------------------
# LocalAttention kernel: one (batch, group-of-kw-windows) tile per grid step.
# --------------------------------------------------------------------------
def _local_attn_kernel(x_ref, prev_ref, chi_ref, shi_ref, clo_ref, slo_ref,
                       bcur_ref, bprev_ref, o_ref, *, scale):
    f32, bf16 = jnp.float32, jnp.bfloat16
    kw, W, D = x_ref.shape[1], x_ref.shape[2], x_ref.shape[3]
    half = D // 2

    x_cur = x_ref[0]                        # (kw, W, D) -- q / current k,v / residual
    prev_win = prev_ref[0]                  # (1,  W, D) -- window preceding this group

    # shared_qk: keys l2-normalized (eps on the norm); normalize each key row
    # ONCE -- backward-window keys are the already-normalized current keys
    # shifted by one window (plus the normalized preceding window).
    def l2norm(t):
        ss = jnp.sum(t * t, axis=-1, keepdims=True)
        return t * jax.lax.rsqrt(jnp.maximum(ss, 1e-24))

    k_cur = l2norm(x_cur)
    k_prev_win = l2norm(prev_win)
    if kw > 1:
        k_prev = jnp.concatenate([k_prev_win, k_cur[:-1]], axis=0)
    else:
        k_prev = k_prev_win

    q = x_cur * scale

    # rotary: rot(x) = x*cos + rotate_half(x)*sin with the duplicated half
    # table; computed on feature halves then re-packed to full D (lane concat
    # is an XLU op) so every sim is a single full-D MXU contraction.
    def rope(t, cos_h, sin_h):
        t1, t2 = t[..., :half], t[..., half:]
        return jnp.concatenate([t1 * cos_h - t2 * sin_h,
                                t2 * cos_h + t1 * sin_h], axis=-1).astype(bf16)

    chi, shi = chi_ref[...], shi_ref[...]
    clo, slo = clo_ref[...], slo_ref[...]
    q_rot = rope(q, chi, shi)               # (kw, W, D) bf16
    kc_rot = rope(k_cur, chi, shi)
    kp_rot = rope(k_prev, clo, slo)

    # values: cast to bf16 BEFORE the shift/concat copy (halves the copy bytes)
    v_cur = x_cur.astype(bf16)
    if kw > 1:
        v_prev = jnp.concatenate([prev_win.astype(bf16), v_cur[:-1]], axis=0)
    else:
        v_prev = prev_win.astype(bf16)

    sim_cur = jnp.einsum('gwd,gjd->gwj', q_rot, kc_rot,
                         preferred_element_type=f32) + bcur_ref[...]      # (kw,W,W)
    sim_prev = jnp.einsum('gwd,gjd->gwj', q_rot, kp_rot,
                          preferred_element_type=f32) + bprev_ref[...]    # (kw,W,W)

    # softmax over (backward window ++ current window) keys
    m = jnp.maximum(jnp.max(sim_cur, axis=-1, keepdims=True),
                    jnp.max(sim_prev, axis=-1, keepdims=True))
    e_cur = jnp.exp(sim_cur - m)
    e_prev = jnp.exp(sim_prev - m)
    denom = (jnp.sum(e_cur, axis=-1, keepdims=True)
             + jnp.sum(e_prev, axis=-1, keepdims=True))
    inv = pl.reciprocal(denom, approx=True)
    # TODO(synk): attention dropout (p=0.1) omitted -- eval/inference semantics.

    ctx = (jnp.einsum('gwj,gjd->gwd', e_cur.astype(bf16), v_cur,
                      preferred_element_type=f32)
           + jnp.einsum('gwj,gjd->gwd', e_prev.astype(bf16), v_prev,
                        preferred_element_type=f32)) * inv
    o_ref[0] = (ctx + x_cur).astype(o_ref.dtype)             # fused residual add


def local_attention_residual(x, *, window_size, consts):
    """y = LocalAttention(x, x, x) + x (causal, look_backward=1, shared_qk, rotary)."""
    B, N, D = x.shape
    W = window_size
    nw = N // W
    vmem = _vmem_limit_bytes()
    kw = _pick_windows_per_step(nw, B, W, D, int(vmem * 0.6))
    half = D // 2
    cos_hi, sin_hi, cos_lo, sin_lo, bias_cur, prev_bias = consts
    x_win = x.reshape(B, nw, W, D)
    kernel = functools.partial(_local_attn_kernel, scale=float(D) ** -0.5)
    cost = _cost_estimate(flops=8 * B * N * W * D,
                          transcendentals=2 * B * N * W + 2 * B * N,
                          bytes_accessed=3 * B * N * D * 4)
    # TODO(synk): for deployed configs keep W and D multiples of 128 (toy W=4,
    # D=32 stores via masked vst); pad the window / model dim otherwise.
    out = pl.pallas_call(
        kernel,
        out_shape=jax.ShapeDtypeStruct((B, nw, W, D), x.dtype),
        grid=(B, nw // kw),
        in_specs=[
            # kw windows per step: q / current-window k,v / residual
            pl.BlockSpec((1, kw, W, D), lambda b, g: (b, g, 0, 0)),
            # window preceding the group: overlapping read of the SAME array,
            # so no duplicated looked-around kv is ever materialized in HBM.
            pl.BlockSpec((1, 1, W, D),
                         lambda b, g: (b, jnp.maximum(g * kw - 1, 0), 0, 0)),
            pl.BlockSpec((W, half), lambda b, g: (0, 0)),     # cos (q / current keys)
            pl.BlockSpec((W, half), lambda b, g: (0, 0)),     # sin (q / current keys)
            pl.BlockSpec((W, half), lambda b, g: (0, 0)),     # cos (backward keys)
            pl.BlockSpec((W, half), lambda b, g: (0, 0)),     # sin (backward keys)
            pl.BlockSpec((W, W), lambda b, g: (0, 0)),        # causal/self additive bias
            pl.BlockSpec((kw, 1, 1), lambda b, g: (g, 0, 0)),  # backward-pad bias
        ],
        out_specs=pl.BlockSpec((1, kw, W, D), lambda b, g: (b, g, 0, 0)),
        compiler_params=pltpu.CompilerParams(
            dimension_semantics=("parallel", "parallel"),
            vmem_limit_bytes=vmem),
        cost_estimate=cost,
    )(x_win, x_win, cos_hi, sin_hi, cos_lo, sin_lo, bias_cur, prev_bias)
    return out.reshape(B, N, D)


# --------------------------------------------------------------------------
# TransformerBlock
# --------------------------------------------------------------------------
def init_params(key, dim, depth, ff_mult):
    hidden = int(dim * ff_mult)
    layers = []
    for _ in range(depth):
        k1, k2, k3, k4, key = jax.random.split(key, 5)
        lim1 = 1.0 / np.sqrt(dim)
        lim2 = 1.0 / np.sqrt(hidden)
        layers.append(dict(
            w1=jax.random.uniform(k1, (dim, hidden), jnp.float32, -lim1, lim1),
            b1=jax.random.uniform(k2, (hidden,), jnp.float32, -lim1, lim1),
            w2=jax.random.uniform(k3, (hidden, dim), jnp.float32, -lim2, lim2),
            b2=jax.random.uniform(k4, (dim,), jnp.float32, -lim2, lim2),
        ))
    return layers


def prepare_params(params):
    """Pre-cast MXU weight operands to bf16 and pre-shape biases ONCE (removes
    an HBM-bound convert op in front of every FFN pallas_call)."""
    out = []
    for p in params:
        out.append(dict(
            w1=p["w1"].astype(jnp.bfloat16),
            b1=p["b1"].reshape(1, -1).astype(jnp.float32),
            w2=p["w2"].astype(jnp.bfloat16),
            b2=p["b2"].reshape(1, -1).astype(jnp.float32),
        ))
    return out


def transformer_block(x, params, *, window_size, causal=True,
                      look_backward=1, look_forward=0):
    assert causal and look_backward == 1 and look_forward == 0, \
        "kernel is specialized to the module defaults (causal, lb=1, lf=0, shared_qk)"
    B, N, D = x.shape
    H = params[0]["w1"].shape[1]
    depth = len(params)
    consts = _attn_consts(N, D, window_size)     # cached per (N, D, window)
    exact = (not GELU_USE_TANH_APPROX) and _erf_supported()
    fuse = _can_fuse_two_ffn(D, H)

    # Per layer l: x = ffn_l(x)+x ; x = attn(x)+x ; x = ffn_l(x)+x.
    # The trailing ffn of layer l and the leading ffn of layer l+1 are
    # back-to-back row-wise ops -> fused into one pallas_call when VMEM allows.
    x = feed_forward_residual(x, [params[0]], exact_gelu=exact)
    for l in range(depth):
        x = local_attention_residual(x, window_size=window_size, consts=consts)
        if l + 1 < depth:
            if fuse:
                x = feed_forward_residual(x, [params[l], params[l + 1]],
                                          exact_gelu=exact)
            else:
                x = feed_forward_residual(x, [params[l]], exact_gelu=exact)
                x = feed_forward_residual(x, [params[l + 1]], exact_gelu=exact)
        else:
            x = feed_forward_residual(x, [params[l]], exact_gelu=exact)
    return x


def make_forward(window_size):
    """Prime trace-unsafe capability probes / hardware queries outside jit and
    return the jitted forward."""
    _erf_supported()
    _buffered_supported()
    _vmem_limit_bytes()
    return jax.jit(functools.partial(transformer_block, window_size=window_size))


if __name__ == "__main__":
    key = jax.random.PRNGKey(0)
    B, N, D = 2, 8, 32          # batch, seq, dim
    depth, window_size, ff_mult = 2, 4, 2

    k_x, k_p = jax.random.split(key)
    x = jax.random.normal(k_x, (B, N, D), jnp.float32)
    params = prepare_params(init_params(k_p, dim=D, depth=depth, ff_mult=ff_mult))

    fwd = make_forward(window_size)
    y = jax.block_until_ready(fwd(x, params))

    assert y.shape == (B, N, D)
    assert bool(jnp.isfinite(y).all())
    print("KERNEL_OK")
</pallas_src>

<mosaic_0001>
module attributes {stable_mosaic.version = 11 : i64} {
  func.func @_k(%arg0: memref<8x128xf32, #tpu.memory_space<vmem>>, %arg1: memref<8x128xf32, #tpu.memory_space<vmem>>) attributes {dimension_semantics = [], scalar_prefetch = 0 : i64, scratch_operands = 0 : i64, tpu.core_type = #tpu.core_type<tc>} {
    %c0 = arith.constant 0 : index
    %c0_0 = arith.constant 0 : index
    %0 = vector.load %arg0[%c0, %c0_0] : memref<8x128xf32, #tpu.memory_space<vmem>>, vector<8x128xf32>
    %1 = math.erf %0 : vector<8x128xf32>
    %c0_1 = arith.constant 0 : index
    %c0_2 = arith.constant 0 : index
    %2 = vector.load %arg1[%c0_1, %c0_2] : memref<8x128xf32, #tpu.memory_space<vmem>>, vector<8x128xf32>
    tpu.vector_store %arg1[%c0_1, %c0_2], %1 {strides = array<i32>} : memref<8x128xf32, #tpu.memory_space<vmem>>, vector<8x128xf32>,
    return
  }
}

module attributes {stable_mosaic.version = 11 : i64} {
  func.func @_k(%arg0: i32, %arg1: memref<8x128xf32, #tpu.memory_space<vmem>>, %arg2: memref<8x128xf32, #tpu.memory_space<vmem>>, %arg3: memref<8x128xf32, #tpu.memory_space<vmem>>) attributes {dimension_semantics = [#tpu.dimension_semantics<arbitrary>], iteration_bounds = array<i64: 1>, scalar_prefetch = 0 : i64, scratch_operands = 0 : i64, tpu.core_type = #tpu.core_type<tc>, window_params = [{pipeline_mode = #tpu.pipeline_mode<synchronous>, transform_indices = @transform_0, window_bounds = array<i64: 8, 128>}, {pipeline_mode = #tpu.pipeline_mode<synchronous>, transform_indices = @transform_1, window_bounds = array<i64: 8, 128>}, {pipeline_mode = #tpu.pipeline_mode<synchronous>, transform_indices = @transform_2, window_bounds = array<i64: 8, 128>}]} {
    %c0 = arith.constant 0 : index
    %c0_0 = arith.constant 0 : index
    %0 = vector.load %arg1[%c0, %c0_0] : memref<8x128xf32, #tpu.memory_space<vmem>>, vector<8x128xf32>
    %c0_1 = arith.constant 0 : index
    %c0_2 = arith.constant 0 : index
    %1 = vector.load %arg2[%c0_1, %c0_2] : memref<8x128xf32, #tpu.memory_space<vmem>>, vector<8x128xf32>
    %2 = arith.addf %0, %1 : vector<8x128xf32>
    %c0_3 = arith.constant 0 : index
    %c0_4 = arith.constant 0 : index
    %3 = vector.load %arg3[%c0_3, %c0_4] : memref<8x128xf32, #tpu.memory_space<vmem>>, vector<8x128xf32>
    tpu.vector_store %arg3[%c0_3, %c0_4], %2 {strides = array<i32>} : memref<8x128xf32, #tpu.memory_space<vmem>>, vector<8x128xf32>,
    return
  }
  func.func @transform_0(%arg0: i32) -> (i32, i32) {
    %c0_i32 = arith.constant 0 : i32
    %c0_i32_0 = arith.constant 0 : i32
    %c0_i32_1 = arith.constant 0 : i32
    return %c0_i32, %c0_i32_0 : i32, i32
  }
  func.func @transform_1(%arg0: i32) -> (i32, i32) {
    %c0_i32 = arith.constant 0 : i32
    %c0_i32_0 = arith.constant 0 : i32
    %c0_i32_1 = arith.constant 0 : i32
    return %c0_i32, %c0_i32_0 : i32, i32
  }
  func.func @transform_2(%arg0: i32) -> (i32, i32) {
    %c0_i32 = arith.constant 0 : i32
    %c0_i32_0 = arith.constant 0 : i32
    %c0_i32_1 = arith.constant 0 : i32
    return %c0_i32, %c0_i32_0 : i32, i32
  }
}

module attributes {stable_mosaic.version = 11 : i64} {
  func.func @_ffn_kernel(%arg0: i32, %arg1: memref<16x32xf32, #tpu.memory_space<vmem>>, %arg2: memref<32x64xbf16, #tpu.memory_space<vmem>>, %arg3: memref<1x64xf32, #tpu.memory_space<vmem>>, %arg4: memref<64x32xbf16, #tpu.memory_space<vmem>>, %arg5: memref<1x32xf32, #tpu.memory_space<vmem>>, %arg6: memref<16x32xf32, #tpu.memory_space<vmem>>) attributes {dimension_semantics = [#tpu.dimension_semantics<parallel>], iteration_bounds = array<i64: 1>, scalar_prefetch = 0 : i64, scratch_operands = 0 : i64, tpu.core_type = #tpu.core_type<tc>, window_params = [{transform_indices = @transform_0, window_bounds = array<i64: 16, 32>}, {pipeline_mode = #tpu.pipeline_mode<synchronous>, transform_indices = @transform_1, window_bounds = array<i64: 32, 64>}, {pipeline_mode = #tpu.pipeline_mode<synchronous>, transform_indices = @transform_2, window_bounds = array<i64: 1, 64>}, {pipeline_mode = #tpu.pipeline_mode<synchronous>, transform_indices = @transform_3, window_bounds = array<i64: 64, 32>}, {pipeline_mode = #tpu.pipeline_mode<synchronous>, transform_indices = @transform_4, window_bounds = array<i64: 1, 32>}, {transform_indices = @transform_5, window_bounds = array<i64: 16, 32>}]} {
    %c0 = arith.constant 0 : index
    %c0_0 = arith.constant 0 : index
    %0 = vector.load %arg1[%c0, %c0_0] : memref<16x32xf32, #tpu.memory_space<vmem>>, vector<16x32xf32>
    %1 = arith.truncf %0 : vector<16x32xf32> to vector<16x32xbf16>
    %c0_1 = arith.constant 0 : index
    %c0_2 = arith.constant 0 : index
    %2 = vector.load %arg2[%c0_1, %c0_2] : memref<32x64xbf16, #tpu.memory_space<vmem>>, vector<32x64xbf16>
    %cst = arith.constant dense<0.000000e+00> : vector<16x64xf32>
    %3 = tpu.matmul %1, %2, %cst {dimension_numbers = #tpu.dot_dimension_numbers<[1], [0], [0], [1], [0, 0, 1, 1], [], []>} : vector<16x32xbf16>, vector<32x64xbf16>, vector<16x64xf32> -> vector<16x64xf32>
    %c0_3 = arith.constant 0 : index
    %c0_4 = arith.constant 0 : index
    %4 = vector.load %arg3[%c0_3, %c0_4] : memref<1x64xf32, #tpu.memory_space<vmem>>, vector<1x64xf32>
    %5 = vector.broadcast %4 : vector<1x64xf32> to vector<16x64xf32>
    %6 = arith.addf %3, %5 : vector<16x64xf32>
    %7 = arith.mulf %6, %6 : vector<16x64xf32>
    %8 = arith.mulf %6, %7 : vector<16x64xf32>
    %cst_5 = arith.constant 4.471500e-02 : f32
    %9 = vector.broadcast %cst_5 : f32 to vector<16x64xf32>
    %10 = arith.mulf %9, %8 : vector<16x64xf32>
    %11 = arith.addf %6, %10 : vector<16x64xf32>
    %cst_6 = arith.constant 0.797884583 : f32
    %12 = vector.broadcast %cst_6 : f32 to vector<16x64xf32>
    %13 = arith.mulf %12, %11 : vector<16x64xf32>
    %14 = math.tanh %13 : vector<16x64xf32>
    %cst_7 = arith.constant 1.000000e+00 : f32
    %15 = vector.broadcast %cst_7 : f32 to vector<16x64xf32>
    %16 = arith.addf %15, %14 : vector<16x64xf32>
    %cst_8 = arith.constant 5.000000e-01 : f32
    %17 = vector.broadcast %cst_8 : f32 to vector<16x64xf32>
    %18 = arith.mulf %17, %16 : vector<16x64xf32>
    %19 = arith.mulf %6, %18 : vector<16x64xf32>
    %20 = arith.truncf %19 : vector<16x64xf32> to vector<16x64xbf16>
    %c0_9 = arith.constant 0 : index
    %c0_10 = arith.constant 0 : index
    %21 = vector.load %arg4[%c0_9, %c0_10] : memref<64x32xbf16, #tpu.memory_space<vmem>>, vector<64x32xbf16>
    %cst_11 = arith.constant dense<0.000000e+00> : vector<16x32xf32>
    %22 = tpu.matmul %20, %21, %cst_11 {dimension_numbers = #tpu.dot_dimension_numbers<[1], [0], [0], [1], [0, 0, 1, 1], [], []>} : vector<16x64xbf16>, vector<64x32xbf16>, vector<16x32xf32> -> vector<16x32xf32>
    %c0_12 = arith.constant 0 : index
    %c0_13 = arith.constant 0 : index
    %23 = vector.load %arg5[%c0_12, %c0_13] : memref<1x32xf32, #tpu.memory_space<vmem>>, vector<1x32xf32>
    %24 = vector.broadcast %23 : vector<1x32xf32> to vector<16x32xf32>
    %25 = arith.addf %22, %24 : vector<16x32xf32>
    %26 = arith.addf %25, %0 : vector<16x32xf32>
    %c0_14 = arith.constant 0 : index
    %c0_15 = arith.constant 0 : index
    %27 = vector.load %arg6[%c0_14, %c0_15] : memref<16x32xf32, #tpu.memory_space<vmem>>, vector<16x32xf32>
    tpu.vector_store %arg6[%c0_14, %c0_15], %26 {strides = array<i32>} : memref<16x32xf32, #tpu.memory_space<vmem>>, vector<16x32xf32>,
    return
  }
  func.func @transform_0(%arg0: i32) -> (i32, i32) {
    %c0_i32 = arith.constant 0 : i32
    %c0_i32_0 = arith.constant 0 : i32
    return %arg0, %c0_i32 : i32, i32
  }
  func.func @transform_1(%arg0: i32) -> (i32, i32) {
    %c0_i32 = arith.constant 0 : i32
    %c0_i32_0 = arith.constant 0 : i32
    %c0_i32_1 = arith.constant 0 : i32
    return %c0_i32, %c0_i32_0 : i32, i32
  }
  func.func @transform_2(%arg0: i32) -> (i32, i32) {
    %c0_i32 = arith.constant 0 : i32
    %c0_i32_0 = arith.constant 0 : i32
    %c0_i32_1 = arith.constant 0 : i32
    return %c0_i32, %c0_i32_0 : i32, i32
  }
  func.func @transform_3(%arg0: i32) -> (i32, i32) {
    %c0_i32 = arith.constant 0 : i32
    %c0_i32_0 = arith.constant 0 : i32
    %c0_i32_1 = arith.constant 0 : i32
    return %c0_i32, %c0_i32_0 : i32, i32
  }
  func.func @transform_4(%arg0: i32) -> (i32, i32) {
    %c0_i32 = arith.constant 0 : i32
    %c0_i32_0 = arith.constant 0 : i32
    %c0_i32_1 = arith.constant 0 : i32
    return %c0_i32, %c0_i32_0 : i32, i32
  }
  func.func @transform_5(%arg0: i32) -> (i32, i32) {
    %c0_i32 = arith.constant 0 : i32
    %c0_i32_0 = arith.constant 0 : i32
    return %arg0, %c0_i32 : i32, i32
  }
}

module attributes {stable_mosaic.version = 11 : i64} {
  func.func @_ffn_kernel(%arg0: i32, %arg1: memref<16x32xf32, #tpu.memory_space<vmem>>, %arg2: memref<32x64xbf16, #tpu.memory_space<vmem>>, %arg3: memref<1x64xf32, #tpu.memory_space<vmem>>, %arg4: memref<64x32xbf16, #tpu.memory_space<vmem>>, %arg5: memref<1x32xf32, #tpu.memory_space<vmem>>, %arg6: memref<16x32xf32, #tpu.memory_space<vmem>>) attributes {dimension_semantics = [#tpu.dimension_semantics<parallel>], iteration_bounds = array<i64: 1>, scalar_prefetch = 0 : i64, scratch_operands = 0 : i64, tpu.core_type = #tpu.core_type<tc>, window_params = [{transform_indices = @transform_0, window_bounds = array<i64: 16, 32>}, {pipeline_mode = #tpu.pipeline_mode<synchronous>, transform_indices = @transform_1, window_bounds = array<i64: 32, 64>}, {pipeline_mode = #tpu.pipeline_mode<synchronous>, transform_indices = @transform_2, window_bounds = array<i64: 1, 64>}, {pipeline_mode = #tpu.pipeline_mode<synchronous>, transform_indices = @transform_3, window_bounds = array<i64: 64, 32>}, {pipeline_mode = #tpu.pipeline_mode<synchronous>, transform_indices = @transform_4, window_bounds = array<i64: 1, 32>}, {transform_indices = @transform_5, window_bounds = array<i64: 16, 32>}]} {
    %c0 = arith.constant 0 : index
    %c0_0 = arith.constant 0 : index
    %0 = vector.load %arg1[%c0, %c0_0] : memref<16x32xf32, #tpu.memory_space<vmem>>, vector<16x32xf32>
    %1 = arith.truncf %0 : vector<16x32xf32> to vector<16x32xbf16>
    %c0_1 = arith.constant 0 : index
    %c0_2 = arith.constant 0 : index
    %2 = vector.load %arg2[%c0_1, %c0_2] : memref<32x64xbf16, #tpu.memory_space<vmem>>, vector<32x64xbf16>
    %cst = arith.constant dense<0.000000e+00> : vector<16x64xf32>
    %3 = tpu.matmul %1, %2, %cst {dimension_numbers = #tpu.dot_dimension_numbers<[1], [0], [0], [1], [0, 0, 1, 1], [], []>} : vector<16x32xbf16>, vector<32x64xbf16>, vector<16x64xf32> -> vector<16x64xf32>
    %c0_3 = arith.constant 0 : index
    %c0_4 = arith.constant 0 : index
    %4 = vector.load %arg3[%c0_3, %c0_4] : memref<1x64xf32, #tpu.memory_space<vmem>>, vector<1x64xf32>
    %5 = vector.broadcast %4 : vector<1x64xf32> to vector<16x64xf32>
    %6 = arith.addf %3, %5 : vector<16x64xf32>
    %7 = arith.mulf %6, %6 : vector<16x64xf32>
    %8 = arith.mulf %6, %7 : vector<16x64xf32>
    %cst_5 = arith.constant 4.471500e-02 : f32
    %9 = vector.broadcast %cst_5 : f32 to vector<16x64xf32>
    %10 = arith.mulf %9, %8 : vector<16x64xf32>
    %11 = arith.addf %6, %10 : vector<16x64xf32>
    %cst_6 = arith.constant 0.797884583 : f32
    %12 = vector.broadcast %cst_6 : f32 to vector<16x64xf32>
    %13 = arith.mulf %12, %11 : vector<16x64xf32>
    %14 = math.tanh %13 : vector<16x64xf32>
    %cst_7 = arith.constant 1.000000e+00 : f32
    %15 = vector.broadcast %cst_7 : f32 to vector<16x64xf32>
    %16 = arith.addf %15, %14 : vector<16x64xf32>
    %cst_8 = arith.constant 5.000000e-01 : f32
    %17 = vector.broadcast %cst_8 : f32 to vector<16x64xf32>
    %18 = arith.mulf %17, %16 : vector<16x64xf32>
    %19 = arith.mulf %6, %18 : vector<16x64xf32>
    %20 = arith.truncf %19 : vector<16x64xf32> to vector<16x64xbf16>
    %c0_9 = arith.constant 0 : index
    %c0_10 = arith.constant 0 : index
    %21 = vector.load %arg4[%c0_9, %c0_10] : memref<64x32xbf16, #tpu.memory_space<vmem>>, vector<64x32xbf16>
    %cst_11 = arith.constant dense<0.000000e+00> : vector<16x32xf32>
    %22 = tpu.matmul %20, %21, %cst_11 {dimension_numbers = #tpu.dot_dimension_numbers<[1], [0], [0], [1], [0, 0, 1, 1], [], []>} : vector<16x64xbf16>, vector<64x32xbf16>, vector<16x32xf32> -> vector<16x32xf32>
    %c0_12 = arith.constant 0 : index
    %c0_13 = arith.constant 0 : index
    %23 = vector.load %arg5[%c0_12, %c0_13] : memref<1x32xf32, #tpu.memory_space<vmem>>, vector<1x32xf32>
    %24 = vector.broadcast %23 : vector<1x32xf32> to vector<16x32xf32>
    %25 = arith.addf %22, %24 : vector<16x32xf32>
    %26 = arith.addf %25, %0 : vector<16x32xf32>
    %c0_14 = arith.constant 0 : index
    %c0_15 = arith.constant 0 : index
    %27 = vector.load %arg6[%c0_14, %c0_15] : memref<16x32xf32, #tpu.memory_space<vmem>>, vector<16x32xf32>
    tpu.vector_store %arg6[%c0_14, %c0_15], %26 {strides = array<i32>} : memref<16x32xf32, #tpu.memory_space<vmem>>, vector<16x32xf32>,
    return
  }
  func.func @transform_0(%arg0: i32) -> (i32, i32) {
    %c0_i32 = arith.constant 0 : i32
    %c0_i32_0 = arith.constant 0 : i32
    return %arg0, %c0_i32 : i32, i32
  }
  func.func @transform_1(%arg0: i32) -> (i32, i32) {
    %c0_i32 = arith.constant 0 : i32
    %c0_i32_0 = arith.constant 0 : i32
    %c0_i32_1 = arith.constant 0 : i32
    return %c0_i32, %c0_i32_0 : i32, i32
  }
  func.func @transform_2(%arg0: i32) -> (i32, i32) {
    %c0_i32 = arith.constant 0 : i32
    %c0_i32_0 = arith.constant 0 : i32
    %c0_i32_1 = arith.constant 0 : i32
    return %c0_i32, %c0_i32_0 : i32, i32
  }
  func.func @transform_3(%arg0: i32) -> (i32, i32) {
    %c0_i32 = arith.constant 0 : i32
    %c0_i32_0 = arith.constant 0 : i32
    %c0_i32_1 = arith.constant 0 : i32
    return %c0_i32, %c0_i32_0 : i32, i32
  }
  func.func @transform_4(%arg0: i32) -> (i32, i32) {
    %c0_i32 = arith.constant 0 : i32
    %c0_i32_0 = arith.constant 0 : i32
    %c0_i32_1 = arith.constant 0 : i32
    return %c0_i32, %c0_i32_0 : i32, i32
  }
  func.func @transform_5(%arg0: i32) -> (i32, i32) {
    %c0_i32 = arith.constant 0 : i32
    %c0_i32_0 = arith.constant 0 : i32
    return %arg0, %c0_i32 : i32, i32
  }
}

module attributes {stable_mosaic.version = 11 : i64} {
  func.func @_local_attn_kernel(%arg0: i32, %arg1: i32, %arg2: memref<1x1x4x32xf32, #tpu.memory_space<vmem>>, %arg3: memref<1x1x4x32xf32, #tpu.memory_space<vmem>>, %arg4: memref<4x16xf32, #tpu.memory_space<vmem>>, %arg5: memref<4x16xf32, #tpu.memory_space<vmem>>, %arg6: memref<4x16xf32, #tpu.memory_space<vmem>>, %arg7: memref<4x16xf32, #tpu.memory_space<vmem>>, %arg8: memref<4x4xf32, #tpu.memory_space<vmem>>, %arg9: memref<1x1x1xf32, #tpu.memory_space<vmem>>, %arg10: memref<1x1x4x32xf32, #tpu.memory_space<vmem>>) attributes {dimension_semantics = [#tpu.dimension_semantics<parallel>, #tpu.dimension_semantics<parallel>], iteration_bounds = array<i64: 2, 2>, scalar_prefetch = 0 : i64, scratch_operands = 0 : i64, tpu.core_type = #tpu.core_type<tc>, window_params = [{transform_indices = @transform_0, window_bounds = array<i64: 1, 1, 4, 32>}, {transform_indices = @transform_1, window_bounds = array<i64: 1, 1, 4, 32>}, {pipeline_mode = #tpu.pipeline_mode<synchronous>, transform_indices = @transform_2, window_bounds = array<i64: 4, 16>}, {pipeline_mode = #tpu.pipeline_mode<synchronous>, transform_indices = @transform_3, window_bounds = array<i64: 4, 16>}, {pipeline_mode = #tpu.pipeline_mode<synchronous>, transform_indices = @transform_4, window_bounds = array<i64: 4, 16>}, {pipeline_mode = #tpu.pipeline_mode<synchronous>, transform_indices = @transform_5, window_bounds = array<i64: 4, 16>}, {pipeline_mode = #tpu.pipeline_mode<synchronous>, transform_indices = @transform_6, window_bounds = array<i64: 4, 4>}, {transform_indices = @transform_7, window_bounds = array<i64: 1, 1, 1>}, {transform_indices = @transform_8, window_bounds = array<i64: 1, 1, 4, 32>}]} {
    %c0 = arith.constant 0 : index
    %c0_0 = arith.constant 0 : index
    %c0_1 = arith.constant 0 : index
    %c0_2 = arith.constant 0 : index
    %0 = vector.load %arg2[%c0, %c0_0, %c0_1, %c0_2] : memref<1x1x4x32xf32, #tpu.memory_space<vmem>>, vector<1x1x4x32xf32>
    %1 = vector.shape_cast %0 : vector<1x1x4x32xf32> to vector<1x4x32xf32>
    %c0_3 = arith.constant 0 : index
    %c0_4 = arith.constant 0 : index
    %c0_5 = arith.constant 0 : index
    %c0_6 = arith.constant 0 : index
    %2 = vector.load %arg3[%c0_3, %c0_4, %c0_5, %c0_6] : memref<1x1x4x32xf32, #tpu.memory_space<vmem>>, vector<1x1x4x32xf32>
    %3 = vector.shape_cast %2 : vector<1x1x4x32xf32> to vector<1x4x32xf32>
    %4 = arith.mulf %1, %1 : vector<1x4x32xf32>
    %cst = arith.constant dense<0.000000e+00> : vector<1x4xf32>
    %5 = vector.multi_reduction <add>, %4, %cst [2] : vector<1x4x32xf32> to vector<1x4xf32>
    %6 = vector.shape_cast %5 : vector<1x4xf32> to vector<1x4x1xf32>
    %cst_7 = arith.constant 1.000000e-24 : f32
    %7 = vector.broadcast %cst_7 : f32 to vector<1x4x1xf32>
    %8 = arith.maximumf %6, %7 : vector<1x4x1xf32>
    %9 = math.rsqrt %8 : vector<1x4x1xf32>
    %10 = vector.broadcast %9 : vector<1x4x1xf32> to vector<1x4x32xf32>
    %11 = arith.mulf %1, %10 : vector<1x4x32xf32>
    %12 = arith.mulf %3, %3 : vector<1x4x32xf32>
    %cst_8 = arith.constant dense<0.000000e+00> : vector<1x4xf32>
    %13 = vector.multi_reduction <add>, %12, %cst_8 [2] : vector<1x4x32xf32> to vector<1x4xf32>
    %14 = vector.shape_cast %13 : vector<1x4xf32> to vector<1x4x1xf32>
    %cst_9 = arith.constant 1.000000e-24 : f32
    %15 = vector.broadcast %cst_9 : f32 to vector<1x4x1xf32>
    %16 = arith.maximumf %14, %15 : vector<1x4x1xf32>
    %17 = math.rsqrt %16 : vector<1x4x1xf32>
    %18 = vector.broadcast %17 : vector<1x4x1xf32> to vector<1x4x32xf32>
    %19 = arith.mulf %3, %18 : vector<1x4x32xf32>
    %cst_10 = arith.constant 0.176776692 : f32
    %20 = vector.broadcast %cst_10 : f32 to vector<1x4x32xf32>
    %21 = arith.mulf %1, %20 : vector<1x4x32xf32>
    %c0_11 = arith.constant 0 : index
    %c0_12 = arith.constant 0 : index
    %22 = vector.load %arg4[%c0_11, %c0_12] : memref<4x16xf32, #tpu.memory_space<vmem>>, vector<4x16xf32>
    %c0_13 = arith.constant 0 : index
    %c0_14 = arith.constant 0 : index
    %23 = vector.load %arg5[%c0_13, %c0_14] : memref<4x16xf32, #tpu.memory_space<vmem>>, vector<4x16xf32>
    %c0_15 = arith.constant 0 : index
    %c0_16 = arith.constant 0 : index
    %24 = vector.load %arg6[%c0_15, %c0_16] : memref<4x16xf32, #tpu.memory_space<vmem>>, vector<4x16xf32>
    %c0_17 = arith.constant 0 : index
    %c0_18 = arith.constant 0 : index
    %25 = vector.load %arg7[%c0_17, %c0_18] : memref<4x16xf32, #tpu.memory_space<vmem>>, vector<4x16xf32>
    %26 = vector.extract_strided_slice %21 {offsets = [0, 0, 0], sizes = [1, 4, 16], strides = [1, 1, 1]} : vector<1x4x32xf32> to vector<1x4x16xf32>
    %27 = vector.extract_strided_slice %21 {offsets = [0, 0, 16], sizes = [1, 4, 16], strides = [1, 1, 1]} : vector<1x4x32xf32> to vector<1x4x16xf32>
    %28 = vector.shape_cast %22 : vector<4x16xf32> to vector<1x4x16xf32>
    %29 = arith.mulf %26, %28 : vector<1x4x16xf32>
    %30 = vector.shape_cast %23 : vector<4x16xf32> to vector<1x4x16xf32>
    %31 = arith.mulf %27, %30 : vector<1x4x16xf32>
    %32 = arith.subf %29, %31 : vector<1x4x16xf32>
    %33 = vector.shape_cast %22 : vector<4x16xf32> to vector<1x4x16xf32>
    %34 = arith.mulf %27, %33 : vector<1x4x16xf32>
    %35 = vector.shape_cast %23 : vector<4x16xf32> to vector<1x4x16xf32>
    %36 = arith.mulf %26, %35 : vector<1x4x16xf32>
    %37 = arith.addf %34, %36 : vector<1x4x16xf32>
    %38 = tpu.concatenate %32, %37 in 2 : vector<1x4x16xf32>, vector<1x4x16xf32> -> vector<1x4x32xf32>
    %39 = arith.truncf %38 : vector<1x4x32xf32> to vector<1x4x32xbf16>
    %40 = vector.extract_strided_slice %11 {offsets = [0, 0, 0], sizes = [1, 4, 16], strides = [1, 1, 1]} : vector<1x4x32xf32> to vector<1x4x16xf32>
    %41 = vector.extract_strided_slice %11 {offsets = [0, 0, 16], sizes = [1, 4, 16], strides = [1, 1, 1]} : vector<1x4x32xf32> to vector<1x4x16xf32>
    %42 = vector.shape_cast %22 : vector<4x16xf32> to vector<1x4x16xf32>
    %43 = arith.mulf %40, %42 : vector<1x4x16xf32>
    %44 = vector.shape_cast %23 : vector<4x16xf32> to vector<1x4x16xf32>
    %45 = arith.mulf %41, %44 : vector<1x4x16xf32>
    %46 = arith.subf %43, %45 : vector<1x4x16xf32>
    %47 = vector.shape_cast %22 : vector<4x16xf32> to vector<1x4x16xf32>
    %48 = arith.mulf %41, %47 : vector<1x4x16xf32>
    %49 = vector.shape_cast %23 : vector<4x16xf32> to vector<1x4x16xf32>
    %50 = arith.mulf %40, %49 : vector<1x4x16xf32>
    %51 = arith.addf %48, %50 : vector<1x4x16xf32>
    %52 = tpu.concatenate %46, %51 in 2 : vector<1x4x16xf32>, vector<1x4x16xf32> -> vector<1x4x32xf32>
    %53 = arith.truncf %52 : vector<1x4x32xf32> to vector<1x4x32xbf16>
    %54 = vector.extract_strided_slice %19 {offsets = [0, 0, 0], sizes = [1, 4, 16], strides = [1, 1, 1]} : vector<1x4x32xf32> to vector<1x4x16xf32>
    %55 = vector.extract_strided_slice %19 {offsets = [0, 0, 16], sizes = [1, 4, 16], strides = [1, 1, 1]} : vector<1x4x32xf32> to vector<1x4x16xf32>
    %56 = vector.shape_cast %24 : vector<4x16xf32> to vector<1x4x16xf32>
    %57 = arith.mulf %54, %56 : vector<1x4x16xf32>
    %58 = vector.shape_cast %25 : vector<4x16xf32> to vector<1x4x16xf32>
    %59 = arith.mulf %55, %58 : vector<1x4x16xf32>
    %60 = arith.subf %57, %59 : vector<1x4x16xf32>
    %61 = vector.shape_cast %24 : vector<4x16xf32> to vector<1x4x16xf32>
    %62 = arith.mulf %55, %61 : vector<1x4x16xf32>
    %63 = vector.shape_cast %25 : vector<4x16xf32> to vector<1x4x16xf32>
    %64 = arith.mulf %54, %63 : vector<1x4x16xf32>
    %65 = arith.addf %62, %64 : vector<1x4x16xf32>
    %66 = tpu.concatenate %60, %65 in 2 : vector<1x4x16xf32>, vector<1x4x16xf32> -> vector<1x4x32xf32>
    %67 = arith.truncf %66 : vector<1x4x32xf32> to vector<1x4x32xbf16>
    %68 = arith.truncf %1 : vector<1x4x32xf32> to vector<1x4x32xbf16>
    %69 = arith.truncf %3 : vector<1x4x32xf32> to vector<1x4x32xbf16>
    "tpu.trace_start"() <{level = 10 : i32, message = "gwd,gjd->gwj"}> : () -> ()
    %cst_19 = arith.constant dense<0.000000e+00> : vector<1x4x4xf32>
    %70 = tpu.matmul %39, %53, %cst_19 {dimension_numbers = #tpu.dot_dimension_numbers<[2], [2], [1], [1], [0, 0, 0, 1, 1, 1], [0], [0]>} : vector<1x4x32xbf16>, vector<1x4x32xbf16>, vector<1x4x4xf32> -> vector<1x4x4xf32>
    "tpu.trace_stop"() : () -> ()
    %c0_20 = arith.constant 0 : index
    %c0_21 = arith.constant 0 : index
    %71 = vector.load %arg8[%c0_20, %c0_21] : memref<4x4xf32, #tpu.memory_space<vmem>>, vector<4x4xf32>
    %72 = vector.shape_cast %71 : vector<4x4xf32> to vector<1x4x4xf32>
    %73 = arith.addf %70, %72 : vector<1x4x4xf32>
    "tpu.trace_start"() <{level = 10 : i32, message = "gwd,gjd->gwj"}> : () -> ()
    %cst_22 = arith.constant dense<0.000000e+00> : vector<1x4x4xf32>
    %74 = tpu.matmul %39, %67, %cst_22 {dimension_numbers = #tpu.dot_dimension_numbers<[2], [2], [1], [1], [0, 0, 0, 1, 1, 1], [0], [0]>} : vector<1x4x32xbf16>, vector<1x4x32xbf16>, vector<1x4x4xf32> -> vector<1x4x4xf32>
    "tpu.trace_stop"() : () -> ()
    %c0_23 = arith.constant 0 : index
    %c0_24 = arith.constant 0 : index
    %c0_25 = arith.constant 0 : index
    %75 = vector.load %arg9[%c0_23, %c0_24, %c0_25] : memref<1x1x1xf32, #tpu.memory_space<vmem>>, vector<1x1x1xf32>
    %76 = vector.broadcast %75 : vector<1x1x1xf32> to vector<1x4x4xf32>
    %77 = arith.addf %74, %76 : vector<1x4x4xf32>
    %cst_26 = arith.constant dense<0xFF800000> : vector<1x4xf32>
    %78 = vector.multi_reduction <maximumf>, %73, %cst_26 [2] : vector<1x4x4xf32> to vector<1x4xf32>
    %79 = vector.shape_cast %78 : vector<1x4xf32> to vector<1x4x1xf32>
    %cst_27 = arith.constant dense<0xFF800000> : vector<1x4xf32>
    %80 = vector.multi_reduction <maximumf>, %77, %cst_27 [2] : vector<1x4x4xf32> to vector<1x4xf32>
    %81 = vector.shape_cast %80 : vector<1x4xf32> to vector<1x4x1xf32>
    %82 = arith.maximumf %79, %81 : vector<1x4x1xf32>
    %83 = vector.broadcast %82 : vector<1x4x1xf32> to vector<1x4x4xf32>
    %84 = arith.subf %73, %83 : vector<1x4x4xf32>
    %85 = math.exp %84 : vector<1x4x4xf32>
    %86 = vector.broadcast %82 : vector<1x4x1xf32> to vector<1x4x4xf32>
    %87 = arith.subf %77, %86 : vector<1x4x4xf32>
    %88 = math.exp %87 : vector<1x4x4xf32>
    %cst_28 = arith.constant dense<0.000000e+00> : vector<1x4xf32>
    %89 = vector.multi_reduction <add>, %85, %cst_28 [2] : vector<1x4x4xf32> to vector<1x4xf32>
    %90 = vector.shape_cast %89 : vector<1x4xf32> to vector<1x4x1xf32>
    %cst_29 = arith.constant dense<0.000000e+00> : vector<1x4xf32>
    %91 = vector.multi_reduction <add>, %88, %cst_29 [2] : vector<1x4x4xf32> to vector<1x4xf32>
    %92 = vector.shape_cast %91 : vector<1x4xf32> to vector<1x4x1xf32>
    %93 = arith.addf %90, %92 : vector<1x4x1xf32>
    %94 = tpu.reciprocal %93 {approx = true} : vector<1x4x1xf32> -> vector<1x4x1xf32>
    %95 = arith.truncf %85 : vector<1x4x4xf32> to vector<1x4x4xbf16>
    "tpu.trace_start"() <{level = 10 : i32, message = "gwj,gjd->gwd"}> : () -> ()
    %cst_30 = arith.constant dense<0.000000e+00> : vector<1x4x32xf32>
    %96 = tpu.matmul %95, %68, %cst_30 {dimension_numbers = #tpu.dot_dimension_numbers<[2], [1], [1], [2], [0, 0, 0, 1, 1, 2], [0], [0]>} : vector<1x4x4xbf16>, vector<1x4x32xbf16>, vector<1x4x32xf32> -> vector<1x4x32xf32>
    "tpu.trace_stop"() : () -> ()
    %97 = arith.truncf %88 : vector<1x4x4xf32> to vector<1x4x4xbf16>
    "tpu.trace_start"() <{level = 10 : i32, message = "gwj,gjd->gwd"}> : () -> ()
    %cst_31 = arith.constant dense<0.000000e+00> : vector<1x4x32xf32>
    %98 = tpu.matmul %97, %69, %cst_31 {dimension_numbers = #tpu.dot_dimension_numbers<[2], [1], [1], [2], [0, 0, 0, 1, 1, 2], [0], [0]>} : vector<1x4x4xbf16>, vector<1x4x32xbf16>, vector<1x4x32xf32> -> vector<1x4x32xf32>
    "tpu.trace_stop"() : () -> ()
    %99 = arith.addf %96, %98 : vector<1x4x32xf32>
    %100 = vector.broadcast %94 : vector<1x4x1xf32> to vector<1x4x32xf32>
    %101 = arith.mulf %99, %100 : vector<1x4x32xf32>
    %102 = arith.addf %101, %1 : vector<1x4x32xf32>
    %c0_32 = arith.constant 0 : index
    %c0_33 = arith.constant 0 : index
    %c0_34 = arith.constant 0 : index
    %c0_35 = arith.constant 0 : index
    %103 = vector.load %arg10[%c0_32, %c0_33, %c0_34, %c0_35] : memref<1x1x4x32xf32, #tpu.memory_space<vmem>>, vector<1x1x4x32xf32>
    %104 = vector.shape_cast %103 : vector<1x1x4x32xf32> to vector<1x4x32xf32>
    %105 = vector.shape_cast %102 : vector<1x4x32xf32> to vector<1x1x4x32xf32>
    tpu.vector_store %arg10[%c0_32, %c0_33, %c0_34, %c0_35], %105 {strides = array<i32>} : memref<1x1x4x32xf32, #tpu.memory_space<vmem>>, vector<1x1x4x32xf32>,
    return
  }
  func.func @transform_0(%arg0: i32, %arg1: i32) -> (i32, i32, i32, i32) {
    %c0_i32 = arith.constant 0 : i32
    %c0_i32_0 = arith.constant 0 : i32
    %c0_i32_1 = arith.constant 0 : i32
    return %arg0, %arg1, %c0_i32, %c0_i32_0 : i32, i32, i32, i32
  }
  func.func @transform_1(%arg0: i32, %arg1: i32) -> (i32, i32, i32, i32) {
    %c1_i32 = arith.constant 1 : i32
    %0 = arith.muli %arg1, %c1_i32 : i32
    %c1_i32_0 = arith.constant 1 : i32
    %1 = arith.subi %0, %c1_i32_0 : i32
    %c0_i32 = arith.constant 0 : i32
    %2 = arith.maxsi %1, %c0_i32 : i32
    %c0_i32_1 = arith.constant 0 : i32
    %c0_i32_2 = arith.constant 0 : i32
    %c0_i32_3 = arith.constant 0 : i32
    return %arg0, %2, %c0_i32_1, %c0_i32_2 : i32, i32, i32, i32
  }
  func.func @transform_2(%arg0: i32, %arg1: i32) -> (i32, i32) {
    %c0_i32 = arith.constant 0 : i32
    %c0_i32_0 = arith.constant 0 : i32
    %c0_i32_1 = arith.constant 0 : i32
    return %c0_i32, %c0_i32_0 : i32, i32
  }
  func.func @transform_3(%arg0: i32, %arg1: i32) -> (i32, i32) {
    %c0_i32 = arith.constant 0 : i32
    %c0_i32_0 = arith.constant 0 : i32
    %c0_i32_1 = arith.constant 0 : i32
    return %c0_i32, %c0_i32_0 : i32, i32
  }
  func.func @transform_4(%arg0: i32, %arg1: i32) -> (i32, i32) {
    %c0_i32 = arith.constant 0 : i32
    %c0_i32_0 = arith.constant 0 : i32
    %c0_i32_1 = arith.constant 0 : i32
    return %c0_i32, %c0_i32_0 : i32, i32
  }
  func.func @transform_5(%arg0: i32, %arg1: i32) -> (i32, i32) {
    %c0_i32 = arith.constant 0 : i32
    %c0_i32_0 = arith.constant 0 : i32
    %c0_i32_1 = arith.constant 0 : i32
    return %c0_i32, %c0_i32_0 : i32, i32
  }
  func.func @transform_6(%arg0: i32, %arg1: i32) -> (i32, i32) {
    %c0_i32 = arith.constant 0 : i32
    %c0_i32_0 = arith.constant 0 : i32
    %c0_i32_1 = arith.constant 0 : i32
    return %c0_i32, %c0_i32_0 : i32, i32
  }
  func.func @transform_7(%arg0: i32, %arg1: i32) -> (i32, i32, i32) {
    %c0_i32 = arith.constant 0 : i32
    %c0_i32_0 = arith.constant 0 : i32
    %c0_i32_1 = arith.constant 0 : i32
    return %arg1, %c0_i32, %c0_i32_0 : i32, i32, i32
  }
  func.func @transform_8(%arg0: i32, %arg1: i32) -> (i32, i32, i32, i32) {
    %c0_i32 = arith.constant 0 : i32
    %c0_i32_0 = arith.constant 0 : i32
    %c0_i32_1 = arith.constant 0 : i32
    return %arg0, %arg1, %c0_i32, %c0_i32_0 : i32, i32, i32, i32
  }
}

module attributes {stable_mosaic.version = 11 : i64} {
  func.func @_ffn_kernel(%arg0: i32, %arg1: memref<16x32xf32, #tpu.memory_space<vmem>>, %arg2: memref<32x64xbf16, #tpu.memory_space<vmem>>, %arg3: memref<1x64xf32, #tpu.memory_space<vmem>>, %arg4: memref<64x32xbf16, #tpu.memory_space<vmem>>, %arg5: memref<1x32xf32, #tpu.memory_space<vmem>>, %arg6: memref<32x64xbf16, #tpu.memory_space<vmem>>, %arg7: memref<1x64xf32, #tpu.memory_space<vmem>>, %arg8: memref<64x32xbf16, #tpu.memory_space<vmem>>, %arg9: memref<1x32xf32, #tpu.memory_space<vmem>>, %arg10: memref<16x32xf32, #tpu.memory_space<vmem>>) attributes {dimension_semantics = [#tpu.dimension_semantics<parallel>], iteration_bounds = array<i64: 1>, scalar_prefetch = 0 : i64, scratch_operands = 0 : i64, tpu.core_type = #tpu.core_type<tc>, window_params = [{transform_indices = @transform_0, window_bounds = array<i64: 16, 32>}, {pipeline_mode = #tpu.pipeline_mode<synchronous>, transform_indices = @transform_1, window_bounds = array<i64: 32, 64>}, {pipeline_mode = #tpu.pipeline_mode<synchronous>, transform_indices = @transform_2, window_bounds = array<i64: 1, 64>}, {pipeline_mode = #tpu.pipeline_mode<synchronous>, transform_indices = @transform_3, window_bounds = array<i64: 64, 32>}, {pipeline_mode = #tpu.pipeline_mode<synchronous>, transform_indices = @transform_4, window_bounds = array<i64: 1, 32>}, {pipeline_mode = #tpu.pipeline_mode<synchronous>, transform_indices = @transform_5, window_bounds = array<i64: 32, 64>}, {pipeline_mode = #tpu.pipeline_mode<synchronous>, transform_indices = @transform_6, window_bounds = array<i64: 1, 64>}, {pipeline_mode = #tpu.pipeline_mode<synchronous>, transform_indices = @transform_7, window_bounds = array<i64: 64, 32>}, {pipeline_mode = #tpu.pipeline_mode<synchronous>, transform_indices = @transform_8, window_bounds = array<i64: 1, 32>}, {transform_indices = @transform_9, window_bounds = array<i64: 16, 32>}]} {
    %c0 = arith.constant 0 : index
    %c0_0 = arith.constant 0 : index
    %0 = vector.load %arg1[%c0, %c0_0] : memref<16x32xf32, #tpu.memory_space<vmem>>, vector<16x32xf32>
    %1 = arith.truncf %0 : vector<16x32xf32> to vector<16x32xbf16>
    %c0_1 = arith.constant 0 : index
    %c0_2 = arith.constant 0 : index
    %2 = vector.load %arg2[%c0_1, %c0_2] : memref<32x64xbf16, #tpu.memory_space<vmem>>, vector<32x64xbf16>
    %cst = arith.constant dense<0.000000e+00> : vector<16x64xf32>
    %3 = tpu.matmul %1, %2, %cst {dimension_numbers = #tpu.dot_dimension_numbers<[1], [0], [0], [1], [0, 0, 1, 1], [], []>} : vector<16x32xbf16>, vector<32x64xbf16>, vector<16x64xf32> -> vector<16x64xf32>
    %c0_3 = arith.constant 0 : index
    %c0_4 = arith.constant 0 : index
    %4 = vector.load %arg3[%c0_3, %c0_4] : memref<1x64xf32, #tpu.memory_space<vmem>>, vector<1x64xf32>
    %5 = vector.broadcast %4 : vector<1x64xf32> to vector<16x64xf32>
    %6 = arith.addf %3, %5 : vector<16x64xf32>
    %7 = arith.mulf %6, %6 : vector<16x64xf32>
    %8 = arith.mulf %6, %7 : vector<16x64xf32>
    %cst_5 = arith.constant 4.471500e-02 : f32
    %9 = vector.broadcast %cst_5 : f32 to vector<16x64xf32>
    %10 = arith.mulf %9, %8 : vector<16x64xf32>
    %11 = arith.addf %6, %10 : vector<16x64xf32>
    %cst_6 = arith.constant 0.797884583 : f32
    %12 = vector.broadcast %cst_6 : f32 to vector<16x64xf32>
    %13 = arith.mulf %12, %11 : vector<16x64xf32>
    %14 = math.tanh %13 : vector<16x64xf32>
    %cst_7 = arith.constant 1.000000e+00 : f32
    %15 = vector.broadcast %cst_7 : f32 to vector<16x64xf32>
    %16 = arith.addf %15, %14 : vector<16x64xf32>
    %cst_8 = arith.constant 5.000000e-01 : f32
    %17 = vector.broadcast %cst_8 : f32 to vector<16x64xf32>
    %18 = arith.mulf %17, %16 : vector<16x64xf32>
    %19 = arith.mulf %6, %18 : vector<16x64xf32>
    %20 = arith.truncf %19 : vector<16x64xf32> to vector<16x64xbf16>
    %c0_9 = arith.constant 0 : index
    %c0_10 = arith.constant 0 : index
    %21 = vector.load %arg4[%c0_9, %c0_10] : memref<64x32xbf16, #tpu.memory_space<vmem>>, vector<64x32xbf16>
    %cst_11 = arith.constant dense<0.000000e+00> : vector<16x32xf32>
    %22 = tpu.matmul %20, %21, %cst_11 {dimension_numbers = #tpu.dot_dimension_numbers<[1], [0], [0], [1], [0, 0, 1, 1], [], []>} : vector<16x64xbf16>, vector<64x32xbf16>, vector<16x32xf32> -> vector<16x32xf32>
    %c0_12 = arith.constant 0 : index
    %c0_13 = arith.constant 0 : index
    %23 = vector.load %arg5[%c0_12, %c0_13] : memref<1x32xf32, #tpu.memory_space<vmem>>, vector<1x32xf32>
    %24 = vector.broadcast %23 : vector<1x32xf32> to vector<16x32xf32>
    %25 = arith.addf %22, %24 : vector<16x32xf32>
    %26 = arith.addf %25, %0 : vector<16x32xf32>
    %27 = arith.truncf %26 : vector<16x32xf32> to vector<16x32xbf16>
    %c0_14 = arith.constant 0 : index
    %c0_15 = arith.constant 0 : index
    %28 = vector.load %arg6[%c0_14, %c0_15] : memref<32x64xbf16, #tpu.memory_space<vmem>>, vector<32x64xbf16>
    %cst_16 = arith.constant dense<0.000000e+00> : vector<16x64xf32>
    %29 = tpu.matmul %27, %28, %cst_16 {dimension_numbers = #tpu.dot_dimension_numbers<[1], [0], [0], [1], [0, 0, 1, 1], [], []>} : vector<16x32xbf16>, vector<32x64xbf16>, vector<16x64xf32> -> vector<16x64xf32>
    %c0_17 = arith.constant 0 : index
    %c0_18 = arith.constant 0 : index
    %30 = vector.load %arg7[%c0_17, %c0_18] : memref<1x64xf32, #tpu.memory_space<vmem>>, vector<1x64xf32>
    %31 = vector.broadcast %30 : vector<1x64xf32> to vector<16x64xf32>
    %32 = arith.addf %29, %31 : vector<16x64xf32>
    %33 = arith.mulf %32, %32 : vector<16x64xf32>
    %34 = arith.mulf %32, %33 : vector<16x64xf32>
    %cst_19 = arith.constant 4.471500e-02 : f32
    %35 = vector.broadcast %cst_19 : f32 to vector<16x64xf32>
    %36 = arith.mulf %35, %34 : vector<16x64xf32>
    %37 = arith.addf %32, %36 : vector<16x64xf32>
    %cst_20 = arith.constant 0.797884583 : f32
    %38 = vector.broadcast %cst_20 : f32 to vector<16x64xf32>
    %39 = arith.mulf %38, %37 : vector<16x64xf32>
    %40 = math.tanh %39 : vector<16x64xf32>
    %cst_21 = arith.constant 1.000000e+00 : f32
    %41 = vector.broadcast %cst_21 : f32 to vector<16x64xf32>
    %42 = arith.addf %41, %40 : vector<16x64xf32>
    %cst_22 = arith.constant 5.000000e-01 : f32
    %43 = vector.broadcast %cst_22 : f32 to vector<16x64xf32>
    %44 = arith.mulf %43, %42 : vector<16x64xf32>
    %45 = arith.mulf %32, %44 : vector<16x64xf32>
    %46 = arith.truncf %45 : vector<16x64xf32> to vector<16x64xbf16>
    %c0_23 = arith.constant 0 : index
    %c0_24 = arith.constant 0 : index
    %47 = vector.load %arg8[%c0_23, %c0_24] : memref<64x32xbf16, #tpu.memory_space<vmem>>, vector<64x32xbf16>
    %cst_25 = arith.constant dense<0.000000e+00> : vector<16x32xf32>
    %48 = tpu.matmul %46, %47, %cst_25 {dimension_numbers = #tpu.dot_dimension_numbers<[1], [0], [0], [1], [0, 0, 1, 1], [], []>} : vector<16x64xbf16>, vector<64x32xbf16>, vector<16x32xf32> -> vector<16x32xf32>
    %c0_26 = arith.constant 0 : index
    %c0_27 = arith.constant 0 : index
    %49 = vector.load %arg9[%c0_26, %c0_27] : memref<1x32xf32, #tpu.memory_space<vmem>>, vector<1x32xf32>
    %50 = vector.broadcast %49 : vector<1x32xf32> to vector<16x32xf32>
    %51 = arith.addf %48, %50 : vector<16x32xf32>
    %52 = arith.addf %51, %26 : vector<16x32xf32>
    %c0_28 = arith.constant 0 : index
    %c0_29 = arith.constant 0 : index
    %53 = vector.load %arg10[%c0_28, %c0_29] : memref<16x32xf32, #tpu.memory_space<vmem>>, vector<16x32xf32>
    tpu.vector_store %arg10[%c0_28, %c0_29], %52 {strides = array<i32>} : memref<16x32xf32, #tpu.memory_space<vmem>>, vector<16x32xf32>,
    return
  }
  func.func @transform_0(%arg0: i32) -> (i32, i32) {
    %c0_i32 = arith.constant 0 : i32
    %c0_i32_0 = arith.constant 0 : i32
    return %arg0, %c0_i32 : i32, i32
  }
  func.func @transform_1(%arg0: i32) -> (i32, i32) {
    %c0_i32 = arith.constant 0 : i32
    %c0_i32_0 = arith.constant 0 : i32
    %c0_i32_1 = arith.constant 0 : i32
    return %c0_i32, %c0_i32_0 : i32, i32
  }
  func.func @transform_2(%arg0: i32) -> (i32, i32) {
    %c0_i32 = arith.constant 0 : i32
    %c0_i32_0 = arith.constant 0 : i32
    %c0_i32_1 = arith.constant 0 : i32
    return %c0_i32, %c0_i32_0 : i32, i32
  }
  func.func @transform_3(%arg0: i32) -> (i32, i32) {
    %c0_i32 = arith.constant 0 : i32
    %c0_i32_0 = arith.constant 0 : i32
    %c0_i32_1 = arith.constant 0 : i32
    return %c0_i32, %c0_i32_0 : i32, i32
  }
  func.func @transform_4(%arg0: i32) -> (i32, i32) {
    %c0_i32 = arith.constant 0 : i32
    %c0_i32_0 = arith.constant 0 : i32
    %c0_i32_1 = arith.constant 0 : i32
    return %c0_i32, %c0_i32_0 : i32, i32
  }
  func.func @transform_5(%arg0: i32) -> (i32, i32) {
    %c0_i32 = arith.constant 0 : i32
    %c0_i32_0 = arith.constant 0 : i32
    %c0_i32_1 = arith.constant 0 : i32
    return %c0_i32, %c0_i32_0 : i32, i32
  }
  func.func @transform_6(%arg0: i32) -> (i32, i32) {
    %c0_i32 = arith.constant 0 : i32
    %c0_i32_0 = arith.constant 0 : i32
    %c0_i32_1 = arith.constant 0 : i32
    return %c0_i32, %c0_i32_0 : i32, i32
  }
  func.func @transform_7(%arg0: i32) -> (i32, i32) {
    %c0_i32 = arith.constant 0 : i32
    %c0_i32_0 = arith.constant 0 : i32
    %c0_i32_1 = arith.constant 0 : i32
    return %c0_i32, %c0_i32_0 : i32, i32
  }
  func.func @transform_8(%arg0: i32) -> (i32, i32) {
    %c0_i32 = arith.constant 0 : i32
    %c0_i32_0 = arith.constant 0 : i32
    %c0_i32_1 = arith.constant 0 : i32
    return %c0_i32, %c0_i32_0 : i32, i32
  }
  func.func @transform_9(%arg0: i32) -> (i32, i32) {
    %c0_i32 = arith.constant 0 : i32
    %c0_i32_0 = arith.constant 0 : i32
    return %arg0, %c0_i32 : i32, i32
  }
}

</mosaic_0001>

<bundles_post_ra>
// kernel: tpu_custom_call.1
= control target key start
LH: loop header
LB: loop body
LE: loop exit
PB: predicated region body
PF: predicated region fallthrough
CT: control target
= control target key end

     0   :  { %6 = vsyncpa [#allocation3], 0  ;;  %s127_s0 = inlined_call_operand.hbm [shape: f32[8,128], index: 0, kind: input, shape index: {}]   ;;  %s128_s1 = inlined_call_operand.hbm [shape: f32[8,128], index: 1, kind: output, shape index: {}]  }
   0x1   :  { %7 = vsyncpa [#allocation4], 0  ;;  %s91_s6 = smov [#allocation2]   ;;  %s43_s10 = scalar_lea.hbm %s127_s0, 128 }
   0x2   :  { %s14_s7 = sshll.u32 %s91_s6, 4  ;;  %p44_p0 = scmp.ne.s32.totalorder %s127_s0, %s43_s10  ;;  %s15_s7 = int_to_ptr.vmem [resolvable:$true] %s14_s7 }
   0x3   :  { %p47_p1 = scmp.lt.u32.totalorder %s43_s10, %s127_s0 }
   0x5   :  { %p49_p2 = pnand %p47_p1, %p44_p0 }
   0x7   :  { %52 = shalt.err (!%p49_p2)
}
   0x8   :  { %s53_s15 = scalar_lea.vmem %s15_s7, 128  ;;  %p58_p4 = scmp.lt.s32.totalorder %s15_s7, %s15_s7 }
   0x9   :  { %p54_p3 = scmp.ne.s32.totalorder %s15_s7, %s53_s15  ;;  %p59_p5 = scmp.lt.s32.totalorder %s53_s15, %s53_s15 }
   0xb   :  { %p60_p6 = por %p59_p5, %p58_p4 }
   0xd   :  { %p61_p7 = pnand %p60_p6, %p54_p3 }
   0xf   :  { %64 = shalt.err (!%p61_p7)
}
  0x10   :  { %17 = dma.hbm_to_vmem [thread:$0]  %s127_s0, 128, %s15_s7, [#allocation3]  }
  0x11   :  { %87 = dma.done.wait [#allocation3], 128  }
  0x12   :  { %88 = vsyncadd [#allocation3], 4294967168  ;;  %v21_v0 = vld [vmem:[#allocation2] sm:$0xff]  ;;  %s92_s18 = smov [#allocation5]  }
  0x13   :  { %41 = verf.f32 %v21_v0  ;;  %s30_s19 = sshll.u32 %s92_s18, 4  ;;  %s31_s19 = int_to_ptr.vmem [resolvable:$true] %s30_s19 }
  0x14   :  { %s65_s20 = scalar_lea.vmem %s31_s19, 128  ;;  %p70_p9 = scmp.lt.s32.totalorder %s31_s19, %s31_s19 }
  0x15   :  { %p66_p8 = scmp.ne.s32.totalorder %s31_s19, %s65_s20  ;;  %p71_p10 = scmp.lt.s32.totalorder %s65_s20, %s65_s20 }
  0x17   :  { %p72_p11 = por %p71_p10, %p70_p9 }
  0x19   :  { %p73_p12 = pnand %p72_p11, %p66_p8 }
  0x1d   :  { %v42_v1 = vpop.eup %41 }
  0x1e   :  { %23 = vst [vmem:[#allocation5] sm:$0xff] %v42_v1 }
  0x1f   :  { %76 = shalt.err (!%p73_p12)
}
  0x20   :  { %s77_s0 = scalar_lea.hbm %s128_s1, 128 }
  0x21   :  { %p78_p13 = scmp.ne.s32.totalorder %s128_s1, %s77_s0  ;;  %p81_p0 = scmp.lt.u32.totalorder %s77_s0, %s128_s1 }
  0x23   :  { %p83_p1 = pnand %p81_p0, %p78_p13 }
  0x25   :  { %86 = shalt.err (!%p83_p1)
}
  0x26   :  { %33 = dma.vmem_to_hbm [thread:$0]  %s31_s19, 128, %s128_s1, [#allocation4]  }
  0x27   :  { %89 = dma.done.wait [#allocation4], 128  }
  0x28   :  { %90 = vsyncadd [#allocation4], 4294967168 }
  0x29   :  { %37 = vsyncpa [#allocation3], 1 }
  0x2a   :  { %38 = vsyncpa [#allocation4], 1 }

// kernel: tpu_custom_call.1
= control target key start
LH: loop header
LB: loop body
LE: loop exit
PB: predicated region body
PF: predicated region fallthrough
CT: control target
= control target key end

     0   :  { %7 = vsyncpa [#allocation3], 0  ;;  %s185_s0 = inlined_call_operand.hbm [shape: f32[8,128], index: 0, kind: input, shape index: {}]   ;;  %s186_s1 = inlined_call_operand.hbm [shape: f32[8,128], index: 1, kind: input, shape index: {}]   ;;  %s187_s2 = inlined_call_operand.hbm [shape: f32[8,128], index: 2, kind: output, shape index: {}]  }
   0x1   :  { %8 = vsyncpa [#allocation6], 0 }
   0x2   :  { %9 = vsyncpa [#allocation4], 0  ;;  %s131_s9 = smov [#allocation2]   ;;  %s132_s11 = smov [#allocation5]  }
   0x3   :  { %s16_s10 = sshll.u32 %s131_s9, 4  ;;  %s26_s12 = sshll.u32 %s132_s11, 4  ;;  %s17_s10 = int_to_ptr.vmem [resolvable:$true] %s16_s10  ;;  %s27_s12 = int_to_ptr.vmem [resolvable:$true] %s26_s12 }
   0x4   :  { %s59_s15 = scalar_lea.hbm %s185_s0, 128 }
   0x5   :  { %p60_p0 = scmp.ne.s32.totalorder %s185_s0, %s59_s15  ;;  %p63_p1 = scmp.lt.u32.totalorder %s59_s15, %s185_s0 }
   0x7   :  { %p65_p2 = pnand %p63_p1, %p60_p0 }
   0x9   :  { %68 = shalt.err (!%p65_p2)
}
   0xa   :  { %s69_s20 = scalar_lea.vmem %s17_s10, 128  ;;  %p74_p4 = scmp.lt.s32.totalorder %s17_s10, %s17_s10 }
   0xb   :  { %p70_p3 = scmp.ne.s32.totalorder %s17_s10, %s69_s20  ;;  %p75_p5 = scmp.lt.s32.totalorder %s69_s20, %s69_s20 }
   0xd   :  { %p76_p6 = por %p75_p5, %p74_p4 }
   0xf   :  { %p77_p7 = pnand %p76_p6, %p70_p3 }
  0x11   :  { %80 = shalt.err (!%p77_p7)
}
  0x12   :  { %19 = dma.hbm_to_vmem [thread:$0]  %s185_s0, 128, %s17_s10, [#allocation3]  }
  0x13   :  { %s81_s25 = scalar_lea.hbm %s186_s1, 128 }
  0x14   :  { %p82_p8 = scmp.ne.s32.totalorder %s186_s1, %s81_s25  ;;  %p85_p9 = scmp.lt.u32.totalorder %s81_s25, %s186_s1 }
  0x16   :  { %p87_p10 = pnand %p85_p9, %p82_p8 }
  0x18   :  { %90 = shalt.err (!%p87_p10)
}
  0x19   :  { %s91_s30 = scalar_lea.vmem %s27_s12, 128  ;;  %p96_p12 = scmp.lt.s32.totalorder %s27_s12, %s27_s12 }
  0x1a   :  { %p92_p11 = scmp.ne.s32.totalorder %s27_s12, %s91_s30  ;;  %p97_p13 = scmp.lt.s32.totalorder %s91_s30, %s91_s30 }
  0x1c   :  { %p98_p0 = por %p97_p13, %p96_p12 }
  0x1e   :  { %p99_p1 = pnand %p98_p0, %p92_p11 }
  0x20   :  { %102 = shalt.err (!%p99_p1)
}
  0x21   :  { %29 = dma.hbm_to_vmem [thread:$0]  %s186_s1, 128, %s27_s12, [#allocation6]  }
  0x22   :  { %125 = dma.done.wait [#allocation3], 128  }
  0x23   :  { %126 = vsyncadd [#allocation3], 4294967168 }
  0x24   :  { %127 = dma.done.wait [#allocation6], 128  }
  0x25   :  { %128 = vsyncadd [#allocation6], 4294967168  ;;  %s133_s4 = smov [#allocation7]   ;;  %v36_v0 = vld [vmem:[#allocation2] sm:$0xff]  ;;  %v37_v1 = vld [vmem:[#allocation5] sm:$0xff] }
  0x26   :  { %s46_s5 = sshll.u32 %s133_s4, 4  ;;  %v38_v2 = vadd.f32 %v37_v1, %v36_v0  ;;  %s47_s5 = int_to_ptr.vmem [resolvable:$true] %s46_s5 }
  0x27   :  { %s103_s6 = scalar_lea.vmem %s47_s5, 128  ;;  %p108_p3 = scmp.lt.s32.totalorder %s47_s5, %s47_s5 }
  0x28   :  { %39 = vst [vmem:[#allocation7] sm:$0xff] %v38_v2  ;;  %p104_p2 = scmp.ne.s32.totalorder %s47_s5, %s103_s6  ;;  %p109_p4 = scmp.lt.s32.totalorder %s103_s6, %s103_s6 }
  0x2a   :  { %p110_p5 = por %p109_p4, %p108_p3 }
  0x2c   :  { %p111_p6 = pnand %p110_p5, %p104_p2 }
  0x2e   :  { %114 = shalt.err (!%p111_p6)
}
  0x2f   :  { %s115_s8 = scalar_lea.hbm %s187_s2, 128 }
  0x30   :  { %p116_p7 = scmp.ne.s32.totalorder %s187_s2, %s115_s8  ;;  %p119_p8 = scmp.lt.u32.totalorder %s115_s8, %s187_s2 }
  0x32   :  { %p121_p9 = pnand %p119_p8, %p116_p7 }
  0x34   :  { %124 = shalt.err (!%p121_p9)
}
  0x35   :  { %49 = dma.vmem_to_hbm [thread:$0]  %s47_s5, 128, %s187_s2, [#allocation4]  }
  0x36   :  { %129 = dma.done.wait [#allocation4], 128  }
  0x37   :  { %130 = vsyncadd [#allocation4], 4294967168 }
  0x38   :  { %53 = vsyncpa [#allocation3], 1 }
  0x39   :  { %54 = vsyncpa [#allocation6], 1 }
  0x3a   :  { %55 = vsyncpa [#allocation4], 1 }

// kernel: transformer_block.5
= control target key start
LH: loop header
LB: loop body
LE: loop exit
PB: predicated region body
PF: predicated region fallthrough
CT: control target
= control target key end

     0   :  { %v253_v0 = vmov 0.0   ;;  %vm254_vm0 = vmmov 0   ;;  %vm47_vm1 = vcmask 261120   ;;  %vm150_vm2 = vcmask 523264   ;;  %s324_s1 = inlined_call_operand.vmem [shape: bf16[32,64], index: 1, kind: input, shape index: {}]   ;;  %s325_s0 = inlined_call_operand.vmem [shape: f32[16,32], index: 0, kind: input, shape index: {}]   ;;  %s326_s3 = inlined_call_operand.vmem [shape: bf16[64,32], index: 3, kind: input, shape index: {}]   ;;  %s327_s2 = inlined_call_operand.vmem [shape: f32[1,64], index: 2, kind: input, shape index: {}]   ;;  %s328_s4 = inlined_call_operand.vmem [shape: f32[1,32], index: 4, kind: input, shape index: {}]   ;;  %s329_s5 = inlined_call_operand.vmem [shape: f32[16,32], index: 5, kind: output, shape index: {}]  }
   0x1   :  { %221 = vmatprep.subr.bf16.mxu0 %v253_v0  ;;  %v243_v1 = vld [vmem:[%s324_s1] sm:$0xff]   ;;  %225 = vmatprep.mubr.msk.bf16.mxu0 %vm254_vm0, %v253_v0  ;;  %v244_v2 = vld [vmem:[%s324_s1 + $0x8] sm:$0xff]   ;;  %v247_v8 = vld [vmem:[%s326_s3 + $0x10] sm:$0xff]  }
   0x2   :  { %229 = vmatprep.subr.bf16.mxu1 %v253_v0  ;;  %237 = vmatprep.mubr.msk.bf16.mxu1 %vm254_vm0, %v253_v0  ;;  %v21_v3 = vld [vmem:[%s325_s0] sm:$0xff]  ;;  %v22_v4 = vld [vmem:[%s325_s0 + $0x8] sm:$0xff]  ;;  %v248_v9 = vld [vmem:[%s326_s3 + $0x18] sm:$0xff]  }
   0x3   :  { %222 = vmatpush3.bf16.msra.mxu0 %v243_v1  ;;  %v23_v5 = vpack.c.bf16 %v22_v4, %v21_v3  ;;  %v245_v6 = vld [vmem:[%s326_s3] sm:$0xff]   ;;  %v246_v7 = vld [vmem:[%s326_s3 + $0x8] sm:$0xff]  }
   0x4   :  { %223 = vmatprep.subr.bf16.mxu0 %v253_v0  ;;  %230 = vmatpush3.bf16.msra.mxu1 %v245_v6  ;;  %v203_v10 = vld [vmem:[%s327_s2] ss:$0 sm:$0xff] }
   0x5   :  { %231 = vmatprep.subr.bf16.mxu1 %v253_v0  ;;  %v207_v36 = vld [vmem:[%s328_s4] ss:$0 sm:$0xff] }
   0x7   :  { %224 = vmatpush3.bf16.msra.mxu0 %v244_v2 }
   0x8   :  { %232 = vmatpush3.bf16.msra.mxu1 %v246_v7 }
   0x9   :  { %233 = vmatprep.subr.bf16.mxu1 %v253_v0 }
   0xa   :  { %226 = vmatmul.mubr.msk.bf16.vlgmr.msra.gmra.mrb[0].mxu0 %vm47_vm1, %v23_v5 }
   0xc   :  { %234 = vmatpush3.bf16.msra.mxu1 %v247_v8 }
   0xd   :  { %235 = vmatprep.subr.bf16.mxu1 %v253_v0 }
  0x10   :  { %236 = vmatpush3.bf16.msra.mxu1 %v248_v9 }
  0xdd   :  { %v85_v11 = vpop.f32.mrb[0].mxu0 }
  0xde   :  { %v86_v12 = vadd.f32 %v203_v10, %v85_v11  ;;  %v227_v13 = vpop.f32.mrb[1].mxu0 }
  0xdf   :  { %v88_v14 = vpop.f32.mrb[2].mxu0 }
  0xe0   :  { %v92_v15 = vmul.f32 %v86_v12, %v86_v12  ;;  %v89_v16 = vadd.f32 %v203_v10, %v88_v14  ;;  %v228_v17 = vpop.f32.mrb[3].mxu0 }
  0xe2   :  { %v94_v18 = vmul.f32 %v92_v15, %v86_v12  ;;  %v93_v19 = vmul.f32 %v89_v16, %v89_v16 }
  0xe4   :  { %v96_v20 = vmul.f32 0.044715, %v94_v18  ;;  %v95_v21 = vmul.f32 %v93_v19, %v89_v16 }
  0xe6   :  { %v98_v22 = vadd.f32 %v96_v20, %v86_v12  ;;  %v97_v23 = vmul.f32 0.044715, %v95_v21 }
  0xe8   :  { %v100_v24 = vmul.f32 0.7978846, %v98_v22  ;;  %v99_v25 = vadd.f32 %v97_v23, %v89_v16 }
  0xea   :  { %249 = vtanh.f32 %v100_v24  ;;  %v101_v26 = vmul.f32 0.7978846, %v99_v25 }
  0xec   :  { %251 = vtanh.f32 %v101_v26 }
  0xf4   :  { %v250_v27 = vpop.eup %249 }
  0xf5   :  { %v104_v28 = vadd.f32 1.0, %v250_v27 }
  0xf6   :  { %v252_v29 = vpop.eup %251 }
  0xf7   :  { %v106_v30 = vmul.f32 0.5, %v104_v28  ;;  %v105_v31 = vadd.f32 1.0, %v252_v29 }
  0xf9   :  { %v107_v32 = vmul.f32 0.5, %v105_v31  ;;  %v108_v33 = vmul.f32 %v106_v30, %v86_v12 }
  0xfb   :  { %v109_v34 = vmul.f32 %v107_v32, %v89_v16 }
  0xfd   :  { %v110_v35 = vpack.c.bf16 %v109_v34, %v108_v33 }
  0xff   :  { %238 = vmatmul.mubr.msk.bf16.vlgmr.msra.gmra.mrb[0].mxu1 %vm150_vm2, %v110_v35 }
 0x1d2   :  { %v188_v37 = vpop.f32.mrb[0].mxu1 }
 0x1d3   :  { %v189_v38 = vadd.f32 %v207_v36, %v188_v37  ;;  %v239_v39 = vpop.f32.mrb[1].mxu1 }
 0x1d4   :  { %v191_v40 = vpop.f32.mrb[2].mxu1 }
 0x1d5   :  { %v195_v41 = vadd.f32 %v189_v38, %v21_v3  ;;  %v192_v42 = vadd.f32 %v207_v36, %v191_v40  ;;  %v240_v43 = vpop.f32.mrb[3].mxu1 }
 0x1d7   :  { %197 = vst.msk [vmem:[%s329_s5] sm:$0xff] %vm47_vm1, %v195_v41  ;;  %v196_v44 = vadd.f32 %v192_v42, %v22_v4 }
 0x1d9   :  { %198 = vst.msk [vmem:[%s329_s5 + $0x8] sm:$0xff] %vm47_vm1, %v196_v44 }

// kernel: transformer_block.9
= control target key start
LH: loop header
LB: loop body
LE: loop exit
PB: predicated region body
PF: predicated region fallthrough
CT: control target
= control target key end

     0   :  { %v293_v1 = vmov 0.0   ;;  %vm294_vm0 = vmmov 0   ;;  %s373_s0 = inlined_call_operand.vmem [shape: f32[16,32], index: 0, kind: input, shape index: {}]   ;;  %s374_s1 = inlined_call_operand.vmem [shape: bf16[32,64], index: 1, kind: input, shape index: {}]   ;;  %s375_s2 = inlined_call_operand.vmem [shape: f32[1,64], index: 2, kind: input, shape index: {}]   ;;  %s376_s3 = inlined_call_operand.vmem [shape: bf16[64,32], index: 3, kind: input, shape index: {}]   ;;  %s377_s4 = inlined_call_operand.vmem [shape: f32[1,32], index: 4, kind: input, shape index: {}]   ;;  %s378_s5 = inlined_call_operand.hbm [shape: f32[16,32], index: 5, kind: output, shape index: {}]  }
   0x1   :  { %v259_v0 = vld [vmem:[%s374_s1] sm:$0xff]   ;;  %234 = vmatprep.subr.bf16.mxu0 %v293_v1  ;;  %242 = vmatprep.subr.bf16.mxu1 %v293_v1  ;;  %v260_v2 = vld [vmem:[%s374_s1 + $0x8] sm:$0xff]  }
   0x2   :  { %235 = vmatpush3.bf16.msra.mxu0 %v259_v0  ;;  %238 = vmatprep.mubr.msk.bf16.mxu0 %vm294_vm0, %v293_v1  ;;  %v22_v3 = vld [vmem:[%s373_s0] sm:$0xff]  ;;  %v23_v4 = vld [vmem:[%s373_s0 + $0x8] sm:$0xff] }
   0x3   :  { %236 = vmatprep.subr.bf16.mxu0 %v293_v1  ;;  %250 = vmatprep.mubr.msk.bf16.mxu1 %vm294_vm0, %v293_v1  ;;  %v24_v5 = vpack.c.bf16 %v23_v4, %v22_v3 }
   0x4   :  { %10 = vsyncpa [#allocation3], 0  ;;  %vm48_vm1 = vcmask 261120   ;;  %v261_v6 = vld [vmem:[%s376_s3] sm:$0xff]   ;;  %v262_v7 = vld [vmem:[%s376_s3 + $0x8] sm:$0xff]   ;;  %vm151_vm2 = vcmask 523264  }
   0x5   :  { %243 = vmatpush3.bf16.msra.mxu1 %v261_v6  ;;  %v263_v8 = vld [vmem:[%s376_s3 + $0x10] sm:$0xff]   ;;  %v264_v9 = vld [vmem:[%s376_s3 + $0x18] sm:$0xff]   ;;  %v216_v10 = vld [vmem:[%s375_s2] ss:$0 sm:$0xff]  ;;  %s295_s9 = smov [#allocation2]  }
   0x6   :  { %237 = vmatpush3.bf16.msra.mxu0 %v260_v2  ;;  %244 = vmatprep.subr.bf16.mxu1 %v293_v1  ;;  %v220_v36 = vld [vmem:[%s377_s4] ss:$0 sm:$0xff]  ;;  %s205_s10 = sshll.u32 %s295_s9, 4  ;;  %s206_s10 = int_to_ptr.vmem [resolvable:$true] %s205_s10 }
   0x7   :  { %s269_s11 = scalar_lea.vmem %s206_s10, 256  ;;  %p274_p1 = scmp.lt.s32.totalorder %s206_s10, %s206_s10 }
   0x8   :  { %p270_p0 = scmp.ne.s32.totalorder %s206_s10, %s269_s11  ;;  %p275_p2 = scmp.lt.s32.totalorder %s269_s11, %s269_s11 }
   0x9   :  { %239 = vmatmul.mubr.msk.bf16.vlgmr.msra.gmra.mrb[0].mxu0 %vm48_vm1, %v24_v5  ;;  %245 = vmatpush3.bf16.msra.mxu1 %v262_v7 }
   0xa   :  { %246 = vmatprep.subr.bf16.mxu1 %v293_v1  ;;  %p276_p3 = por %p275_p2, %p274_p1 }
   0xc   :  { %p277_p4 = pnand %p276_p3, %p270_p0 }
   0xd   :  { %247 = vmatpush3.bf16.msra.mxu1 %v263_v8 }
   0xe   :  { %248 = vmatprep.subr.bf16.mxu1 %v293_v1 }
  0x11   :  { %249 = vmatpush3.bf16.msra.mxu1 %v264_v9 }
  0xdc   :  { %v86_v11 = vpop.f32.mrb[0].mxu0 }
  0xdd   :  { %v87_v12 = vadd.f32 %v216_v10, %v86_v11  ;;  %v240_v13 = vpop.f32.mrb[1].mxu0 }
  0xde   :  { %v89_v14 = vpop.f32.mrb[2].mxu0 }
  0xdf   :  { %v93_v15 = vmul.f32 %v87_v12, %v87_v12  ;;  %v90_v16 = vadd.f32 %v216_v10, %v89_v14  ;;  %v241_v17 = vpop.f32.mrb[3].mxu0 }
  0xe1   :  { %v95_v18 = vmul.f32 %v93_v15, %v87_v12  ;;  %v94_v19 = vmul.f32 %v90_v16, %v90_v16 }
  0xe3   :  { %v97_v20 = vmul.f32 0.044715, %v95_v18  ;;  %v96_v21 = vmul.f32 %v94_v19, %v90_v16 }
  0xe5   :  { %v99_v22 = vadd.f32 %v97_v20, %v87_v12  ;;  %v98_v23 = vmul.f32 0.044715, %v96_v21 }
  0xe7   :  { %v101_v24 = vmul.f32 0.7978846, %v99_v22  ;;  %v100_v25 = vadd.f32 %v98_v23, %v90_v16 }
  0xe9   :  { %265 = vtanh.f32 %v101_v24  ;;  %v102_v26 = vmul.f32 0.7978846, %v100_v25 }
  0xeb   :  { %267 = vtanh.f32 %v102_v26 }
  0xf3   :  { %v266_v27 = vpop.eup %265 }
  0xf4   :  { %v105_v28 = vadd.f32 1.0, %v266_v27 }
  0xf5   :  { %v268_v29 = vpop.eup %267 }
  0xf6   :  { %v107_v30 = vmul.f32 0.5, %v105_v28  ;;  %v106_v31 = vadd.f32 1.0, %v268_v29 }
  0xf8   :  { %v108_v32 = vmul.f32 0.5, %v106_v31  ;;  %v109_v33 = vmul.f32 %v107_v30, %v87_v12 }
  0xfa   :  { %v110_v34 = vmul.f32 %v108_v32, %v90_v16 }
  0xfc   :  { %v111_v35 = vpack.c.bf16 %v110_v34, %v109_v33 }
  0xfe   :  { %251 = vmatmul.mubr.msk.bf16.vlgmr.msra.gmra.mrb[0].mxu1 %vm151_vm2, %v111_v35 }
 0x1d1   :  { %v189_v37 = vpop.f32.mrb[0].mxu1 }
 0x1d2   :  { %v190_v38 = vadd.f32 %v220_v36, %v189_v37  ;;  %v252_v39 = vpop.f32.mrb[1].mxu1 }
 0x1d3   :  { %v192_v40 = vpop.f32.mrb[2].mxu1 }
 0x1d4   :  { %v196_v41 = vadd.f32 %v190_v38, %v22_v3  ;;  %v193_v42 = vadd.f32 %v220_v36, %v192_v40  ;;  %v253_v43 = vpop.f32.mrb[3].mxu1 }
 0x1d6   :  { %198 = vst.msk [vmem:[#allocation2] sm:$0xff] %vm48_vm1, %v196_v41  ;;  %v197_v44 = vadd.f32 %v193_v42, %v23_v4 }
 0x1d8   :  { %199 = vst.msk [vmem:[#allocation2 + $0x8] sm:$0xff] %vm48_vm1, %v197_v44 }
 0x1d9   :  { %280 = shalt.err (!%p277_p4)
}
 0x1da   :  { %s281_s13 = scalar_lea.hbm %s378_s5, 256 }
 0x1db   :  { %p282_p5 = scmp.ne.s32.totalorder %s378_s5, %s281_s13  ;;  %p285_p6 = scmp.lt.u32.totalorder %s281_s13, %s378_s5 }
 0x1dd   :  { %p287_p7 = pnand %p285_p6, %p282_p5 }
 0x1df   :  { %290 = shalt.err (!%p287_p7)
}
 0x1e0   :  { %s296_s18 = smov 128   ;;  %s297_s19 = smov 8  }
 0x1e1   :  { %211 = dma.vmem_to_hbm [thread:$0]  %s206_s10, 256, %s378_s5, [#allocation3], %s296_s18, %s296_s18, %s297_s19  }
 0x1e2   :  { %291 = dma.done.wait [#allocation3], 256  }
 0x1e3   :  { %292 = vsyncadd [#allocation3], 4294967040 }
 0x1e4   :  { %215 = vsyncpa [#allocation3], 1 }

// kernel: transformer_block.6
= control target key start
LH: loop header
LB: loop body
LE: loop exit
PB: predicated region body
PF: predicated region fallthrough
CT: control target
= control target key end

     0   :  { %s1039_s27 = smov 0   ;;  %s1041_s28 = smov 0   ;;  %s1177_s0 = inlined_call_operand.vmem [shape: f32[2,2,4,32], index: 0, kind: input, shape index: {}, may-alias: {0,1}]   ;;  %s1178_s1 = inlined_call_operand.vmem [shape: f32[2,2,4,32], index: 1, kind: input, shape index: {}, may-alias: {0,1}]   ;;  %s1179_s2 = inlined_call_operand.vmem [shape: f32[4,16], index: 2, kind: input, shape index: {}]   ;;  %s1180_s3 = inlined_call_operand.vmem [shape: f32[4,16], index: 3, kind: input, shape index: {}]   ;;  %s1181_s4 = inlined_call_operand.vmem [shape: f32[4,16], index: 4, kind: input, shape index: {}]   ;;  %s1182_s5 = inlined_call_operand.vmem [shape: f32[4,16], index: 5, kind: input, shape index: {}]   ;;  %s1183_s6 = inlined_call_operand.vmem [shape: f32[4,4], index: 6, kind: input, shape index: {}]   ;;  %s1184_s7 = inlined_call_operand.vmem [shape: f32[2,1,1], index: 7, kind: input, shape index: {}]   ;;  %s1185_s8 = inlined_call_operand.vmem [shape: f32[2,2,4,32], index: 8, kind: output, shape index: {}]  }
   0x1   :  { %s1043_s29 = smov 0   ;;  %s1045_s30 = smov 0  }
   0x2   :  { %s1047_s9 = smov 0  }
   0x3 LB: > { %s27_s10 = sadd.s32 1, %s979_s29  ;;  %s30_s11 = sadd.s32 1, %s983_s30  ;;  %s987_s9 = sphi %s1047_s9, %s18_s9   ;;  %s983_s30 = sphi %s1045_s30, %s1189_s30   ;;  %s979_s29 = sphi %s1043_s29, %s1188_s29   ;;  %s975_s28 = sphi %s1041_s28, %s1187_s28   ;;  %s971_s27 = sphi %s1039_s27, %s1186_s27  }
   0x4   : > { %p28_p0 = scmp.ge.s32.totalorder %s27_s10, 2  ;;  %p834_p1 = scmp.ge.s32.totalorder %s987_s9, 1 }
   0x5   : > { %p316_p2 = scmp.lt.s32.totalorder %s987_s9, 5 }
   0x6   : > { %s1191_s10 = smov (%p28_p0, %s27_s10), 0  ;;  %s1193_s11 = smov (!%p28_p0, %s30_s11), %s983_s30 }
   0x7   : > { %p317_p3 = pnand %p834_p1, %p316_p2  ;;  %p32_p4 = scmp.ge.s32.totalorder %s1193_s11, 2 }
   0x8   : > { %p370_p5 = scmp.lt.s32.totalorder (!%p317_p3), %s975_s28, 1  ;;  %p372_p6 = scmp.lt.s32.totalorder (!%p317_p3), %s971_s27, 1  ;;  %v423_v0 = vld [vmem:[%s1180_s3] sm:$0xf] (!%p317_p3)  ;;  %vm407_vm0 = vcmask (!%p317_p3), 257024   ;;  %v991_v20 = vmov (!%p317_p3), 0.0  }
   0x9   : > { %s1195_s11 = smov (%p32_p4, %s1193_s11), 0  ;;  %320 = sbr.rel (%p317_p3) target bundleno = 930 (0x3a2), region = 52 }
   0xa   : > { %s837_s14 = sadd.s32 (!%p317_p3), 4294967295, %s971_s27  ;;  %s989_s15 = smov (!%p317_p3), 16   ;;  %v425_v1 = vld [vmem:[%s1182_s5] sm:$0xf] (!%p317_p3)  ;;  %864 = vmatprep.subr.bf16.mxu1 (!%p317_p3), %v991_v20  ;;  %876 = vmatprep.subr.bf16.mxu0 (!%p317_p3), %v991_v20  ;;  %vm992_vm1 = vmmov (!%p317_p3), 0   ;;  %v993_v28 = vmov (!%p317_p3), 0  }
   0xb   : > { %428 = vrot.lane.b32.xlu1 (!%p317_p3), %v423_v0, %s989_s15  ;;  %p379_p7 = scmp.gt.s32.totalorder (!%p317_p3), %s837_s14, 0  ;;  %p838_p8 = scmp.lt.s32.totalorder (!%p317_p3), %s837_s14, 1  ;;  %v1091_v2 = vld [vmem:[%s1181_s4] sm:$0xf] (!%p317_p3)  ;;  %866 = vmatprep.mubr.msk.bf16.mxu1 (!%p317_p3), %vm992_vm1, %v991_v20  ;;  %vm448_vm2 = vcmask (!%p317_p3), 130048   ;;  %vm494_vm3 = vcmask (!%p317_p3), 261120  }
   0xc   : > { %v422_v9 = vld [vmem:[%s1179_s2] sm:$0xf] (!%p317_p3)  ;;  %878 = vmatprep.mubr.msk.bf16.mxu0 (!%p317_p3), %vm992_vm1, %v991_v20  ;;  %937 = vset.pattern.permute.xlu1 (!%p317_p3), %v993_v28  ;;  %vm594_vm4 = vcmask (!%p317_p3), 27648   ;;  %vm622_vm5 = vcmask (!%p317_p3), 1041408   ;;  %vm618_vm6 = vcmask (!%p317_p3), 31744  }
   0xd   : > { %938 = vset.pattern.permute.xlu0 (!%p317_p3), %v993_v28  ;;  %v493_v58 = vld [vmem:[%s1183_s6] sm:$0xf] (!%p317_p3) }
   0xf   : > { %469 = vrot.lane.b32.xlu1 (!%p317_p3), %v425_v1, %s989_s15 }
  0x10   : > { %s1197_s28 = smov (!%p370_p5, %s975_s28), 1  ;;  %s1199_s27 = smov (!%p372_p6, %s971_s27), 1 }
  0x11   : > { %s835_s18 = sshll.u32 %s1197_s28, 1  ;;  %s1201_s14 = smov (!%p379_p7, %s837_s14), 0 }
  0x12   : > { %s1079_s19 = sadd.s32 %s835_s18, %s1199_s27  ;;  %s1203_s14 = smov (!%p838_p8, %s1201_s14), 1 }
  0x13   : > { %s836_s20 = sshll.u32 %s1079_s19, 2  ;;  %479 = vrot.lane.b32.xlu1 %v1091_v2, %s989_s15  ;;  %s386_s26 = sadd.s32 %s1203_s14, %s835_s18 }
  0x14   : > { %s377_s23 = scalar_lea.vmem %s1177_s0, %s836_s20  ;;  %s844_s28 = sshll.u32 %s386_s26, 2 }
  0x15   : > { %v1093_v3 = vld [vmem:[%s377_s23] sm:$0xf]  ;;  %s388_s16 = scalar_lea.vmem %s1178_s1, %s844_s28  ;;  %s990_s14 = smov 112  }
  0x16   : > { %v406_v4 = vmul.f32 %v1093_v3, %v1093_v3  ;;  %v1103_v6 = vld [vmem:[%s388_s16] sm:$0xf]  ;;  %v421_v10 = vmul.f32 0.17677669, %v1093_v3  ;;  %s394_s23 = scalar_lea.vmem %s1184_s7, %s1199_s27  ;;  %s402_s26 = scalar_lea.vmem %s1185_s8, %s836_s20 }
  0x17   : > { %v414_v7 = vmul.f32 %v1103_v6, %v1103_v6  ;;  %v848_v29 = vld [vmem:[%s394_s23] ss:$0 sm:$0xff] }
  0x18   : > { %v408_v5 = vsel %vm407_vm0, %v406_v4, 0.0  ;;  %v442_v24 = vmul.f32 %v423_v0, %v421_v10  ;;  %v426_v40 = vmul.f32 %v422_v9, %v421_v10 }
  0x19   : > { %409 = vadd.xlane.f32.xlu0 %v408_v5  ;;  %v415_v8 = vsel %vm407_vm0, %v414_v7, 0.0 }
  0x1d   : > { %416 = vadd.xlane.f32.xlu0 %v415_v8 }
  0x33   : > { %438 = vrot.lane.b32.xlu0 %v422_v9, %s989_s15 }
  0x7d   : > { %v429_v11 = vpop.permute.xlu1 %428 }
  0x7e   : > { %v431_v12 = vmul.f32 %v429_v11, %v421_v10 }
  0x80   : > { %433 = vrot.lane.b32.xlu1 %v431_v12, %s990_s14 }
  0x81   : > { %v470_v26 = vpop.permute.xlu1 %469 }
  0x85   : > { %v480_v30 = vpop.permute.xlu1 %479 }
  0xa6   : > { %v410_v13 = vpop.xlane.xlu0 %409 }
  0xa7   : > { %v411_v14 = vmax.f32 %v410_v13, 1e-24 }
  0xa9   : > { %939 = vrsqrt.f32 %v411_v14 }
  0xaa   : > { %v417_v15 = vpop.xlane.xlu0 %416 }
  0xab   : > { %v418_v16 = vmax.f32 %v417_v15, 1e-24 }
  0xad   : > { %941 = vrsqrt.f32 %v418_v16 }
  0xae   : > { %v439_v32 = vpop.permute.xlu0 %438 }
  0xaf   : > { %v441_v39 = vmul.f32 %v439_v32, %v421_v10  ;;  %v492_v10 = vpack.c.bf16 %v1103_v6, %v1103_v6 }
  0xb3   : > { %v940_v17 = vpop.eup %939 }
  0xb4   : > { %v413_v18 = vmul.f32 %v940_v17, %v1093_v3 }
  0xb6   : > { %v452_v19 = vmul.f32 %v429_v11, %v413_v18  ;;  %v459_v22 = vmul.f32 %v423_v0, %v413_v18  ;;  %v458_v34 = vmul.f32 %v439_v32, %v413_v18  ;;  %v451_v35 = vmul.f32 %v422_v9, %v413_v18 }
  0xb7   : > { %v942_v21 = vpop.eup %941  ;;  %v624_v11 = vsel %vm622_vm5, %v492_v10, 0 }
  0xb8   : > { %454 = vrot.lane.b32.xlu1 %v452_v19, %s990_s14  ;;  %v420_v23 = vmul.f32 %v942_v21, %v1103_v6  ;;  %877 = vmatpush3.bf16.msra.mxu0 %v624_v11  ;;  %v491_v19 = vpack.c.bf16 %v1093_v3, %v1093_v3 }
  0xb9   : > { %882 = vmatprep.subr.bf16.mxu0 %v991_v20 }
  0xba   : > { %v483_v25 = vmul.f32 %v425_v1, %v420_v23  ;;  %v472_v27 = vmul.f32 %v470_v26, %v420_v23  ;;  %v482_v47 = vmul.f32 %v480_v30, %v420_v23  ;;  %v467_v49 = vmul.f32 %v1091_v2, %v420_v23 }
  0xbb   : > { %v670_v23 = vsel %vm622_vm5, %v491_v19, 0 }
  0xbc   : > { %461 = vrot.lane.b32.xlu1 %v459_v22, %s989_s15  ;;  %485 = vrot.lane.b32.xlu0 %v483_v25, %s989_s15 }
  0xc0   : > { %444 = vrot.lane.b32.xlu1 %v442_v24, %s989_s15 }
  0xc4   : > { %474 = vrot.lane.b32.xlu1 %v472_v27, %s990_s14 }
  0xc8   : > { %548 = vperm.xlu1 %937, %v848_v29  }
  0xf2   : > { %v434_v31 = vpop.permute.xlu1 %433 }
  0xf3   : > { %v436_v48 = vsub.f32 %v426_v40, %v434_v31 }
 0x12a   : > { %v455_v33 = vpop.permute.xlu1 %454 }
 0x12b   : > { %v457_v37 = vsub.f32 %v451_v35, %v455_v33 }
 0x12e   : > { %v462_v36 = vpop.permute.xlu1 %461  ;;  %v486_v45 = vpop.permute.xlu0 %485 }
 0x12f   : > { %v464_v38 = vadd.f32 %v462_v36, %v458_v34  ;;  %v488_v51 = vadd.f32 %v486_v45, %v482_v47 }
 0x131   : > { %v465_v41 = vsel %vm448_vm2, %v457_v37, %v464_v38 }
 0x132   : > { %v445_v42 = vpop.permute.xlu1 %444  ;;  %v466_v43 = vpack.c.bf16 %v465_v41, %v465_v41 }
 0x133   : > { %v447_v44 = vadd.f32 %v445_v42, %v441_v39 }
 0x134   : > { %v499_v46 = vsel %vm494_vm3, %v466_v43, 0 }
 0x135   : > { %865 = vmatpush3.bf16.xpose.msra.mxu1 %v499_v46  ;;  %v449_v52 = vsel %vm448_vm2, %v436_v48, %v447_v44 }
 0x136   : > { %v475_v50 = vpop.permute.xlu1 %474  ;;  %870 = vmatprep.subr.bf16.mxu1 %v991_v20  ;;  %v450_v55 = vpack.c.bf16 %v449_v52, %v449_v52 }
 0x137   : > { %v477_v53 = vsub.f32 %v467_v49, %v475_v50 }
 0x139   : > { %v489_v54 = vsel %vm448_vm2, %v477_v53, %v488_v51 }
 0x13a   : > { %v490_v56 = vpack.c.bf16 %v489_v54, %v489_v54 }
 0x13c   : > { %867 = vmatmul.mubr.msk.bf16.vlgmr.msra.gmra.mrb[0].mxu1 %vm494_vm3, %v450_v55  ;;  %v552_v57 = vsel %vm494_vm3, %v490_v56, 0 }
 0x13d   : > { %871 = vmatpush3.bf16.xpose.msra.mxu1 %v552_v57  ;;  %872 = vmatprep.mubr.msk.bf16.mxu1 %vm992_vm1, %v991_v20 }
 0x144   : > { %873 = vmatmul.mubr.msk.bf16.vlgmr.msra.gmra.mrb[4].mxu1 %vm494_vm3, %v450_v55 }
 0x147   : > { %v549_v1 = vpop.permute.xlu1 %548 }
 0x20f   : > { %v535_v59 = vpop.f32.mrb[0].mxu1 }
 0x210   : > { %v536_v60 = vadd.f32 %v535_v59, %v493_v58  ;;  %v868_v61 = vpop.f32.mrb[1].mxu1 }
 0x211   : > { %v538_v62 = vpop.f32.mrb[2].mxu1 }
 0x212   : > { %v869_v63 = vpop.f32.mrb[3].mxu1  ;;  %v595_v0 = vsel %vm594_vm4, %v536_v60, -inf }
 0x213   : > { %596 = vmax.xlane.f32.xlu0 %v595_v0 }
 0x217   : > { %v588_v2 = vpop.f32.mrb[4].mxu1 }
 0x218   : > { %v589_v4 = vadd.f32 %v588_v2, %v549_v1  ;;  %v874_v5 = vpop.f32.mrb[5].mxu1 }
 0x219   : > { %v591_v7 = vpop.f32.mrb[6].mxu1 }
 0x21a   : > { %v875_v8 = vpop.f32.mrb[7].mxu1  ;;  %v598_v9 = vsel %vm594_vm4, %v589_v4, -inf }
 0x21b   : > { %599 = vmax.xlane.f32.xlu1 %v598_v9 }
 0x2a0   : > { %v597_v12 = vpop.xlane.xlu0 %596 }
 0x2a8   : > { %v600_v13 = vpop.xlane.xlu1 %599 }
 0x2a9   : > { %v601_v14 = vmax.f32 %v597_v12, %v600_v13 }
 0x2ab   : > { %v602_v15 = vsub.f32 %v536_v60, %v601_v14  ;;  %v605_v16 = vsub.f32 %v589_v4, %v601_v14 }
 0x2ad   : > { %v603_v17 = vmul.f32 1.442695, %v602_v15  ;;  %v606_v18 = vmul.f32 1.442695, %v605_v16 }
 0x2af   : > { %943 = vpow2.f32 %v603_v17 }
 0x2b0   : > { %945 = vpow2.f32 %v606_v18 }
 0x2b9   : > { %v944_v21 = vpop.eup %943 }
 0x2ba   : > { %v946_v6 = vpop.eup %945  ;;  %v608_v22 = vsel %vm594_vm4, %v944_v21, 0.0  ;;  %v616_v26 = vpack.c.bf16 %v944_v21, %v944_v21 }
 0x2bb   : > { %609 = vadd.xlane.f32.xlu0 %v608_v22  ;;  %v617_v24 = vpack.c.bf16 %v946_v6, %v946_v6  ;;  %v611_v25 = vsel %vm594_vm4, %v946_v6, 0.0 }
 0x2bd   : > { %879 = vmatmul.mubr.msk.bf16.vlgmr.msra.gmra.mrb[0].mxu0 %vm618_vm6, %v617_v24 }
 0x2be   : > { %883 = vmatpush3.bf16.msra.mxu0 %v670_v23  ;;  %884 = vmatprep.mubr.msk.bf16.mxu0 %vm992_vm1, %v991_v20 }
 0x2bf   : > { %612 = vadd.xlane.f32.xlu0 %v611_v25 }
 0x2c9   : > { %885 = vmatmul.mubr.msk.bf16.vlgmr.msra.gmra.mrb[0].mxu0 %vm618_vm6, %v616_v26 }
 0x348   : > { %v610_v27 = vpop.xlane.xlu0 %609 }
 0x34c   : > { %v613_v28 = vpop.xlane.xlu0 %612 }
 0x34d   : > { %v614_v29 = vadd.f32 %v613_v28, %v610_v27 }
 0x34f   : > { %947 = vrcp.f32 %v614_v29 }
 0x359   : > { %v948_v30 = vpop.eup %947 }
 0x39c   : > { %v706_v31 = vpop.f32.mrb[0].mxu0 }
 0x39d   : > { %v712_v32 = vmul.f32 %v948_v30, %v706_v31  ;;  %v886_v33 = vpop.f32.mrb[1].mxu0 }
 0x39e   : > { %v709_v34 = vpop.f32.mrb[2].mxu0 }
 0x39f   : > { %v713_v35 = vadd.f32 %v712_v32, %v1093_v3  ;;  %v887_v20 = vpop.f32.mrb[3].mxu0 }
 0x3a1   : > { %714 = vst.msk [vmem:[%s402_s26] sm:$0xf] %vm407_vm0, %v713_v35 }
 0x3a2 PF: > { %s18_s9 = sadd.s32 1, %s987_s9   ;;  %s1186_s27 = smov %s979_s29 }
 0x3a3   : > { %p15_p9 = scmp.ge.s32.totalorder %s18_s9, 6   ;;  %s1187_s28 = smov %s983_s30 }
 0x3a4   : > { %s1188_s29 = smov %s1191_s10  ;;  %s1189_s30 = smov %s1195_s11 }
 0x3a5   :  { %17 = sbr.rel (!%p15_p9) target bundleno = 3 (0x3), region = 88 }

// kernel: transformer_block.7
= control target key start
LH: loop header
LB: loop body
LE: loop exit
PB: predicated region body
PF: predicated region fallthrough
CT: control target
= control target key end

     0   :  { %v485_v0 = vmov 0.0   ;;  %vm486_vm0 = vmmov 0   ;;  %vm59_vm1 = vcmask 261120   ;;  %vm162_vm2 = vcmask 523264   ;;  %s631_s1 = inlined_call_operand.vmem [shape: bf16[32,64], index: 1, kind: input, shape index: {}]   ;;  %s632_s0 = inlined_call_operand.vmem [shape: f32[16,32], index: 0, kind: input, shape index: {}]   ;;  %s633_s3 = inlined_call_operand.vmem [shape: bf16[64,32], index: 3, kind: input, shape index: {}]   ;;  %s634_s2 = inlined_call_operand.vmem [shape: f32[1,64], index: 2, kind: input, shape index: {}]   ;;  %s635_s5 = inlined_call_operand.vmem [shape: bf16[32,64], index: 5, kind: input, shape index: {}]   ;;  %s636_s4 = inlined_call_operand.vmem [shape: f32[1,32], index: 4, kind: input, shape index: {}]   ;;  %s637_s7 = inlined_call_operand.vmem [shape: bf16[64,32], index: 7, kind: input, shape index: {}]   ;;  %s638_s6 = inlined_call_operand.vmem [shape: f32[1,64], index: 6, kind: input, shape index: {}]   ;;  %s639_s8 = inlined_call_operand.vmem [shape: f32[1,32], index: 8, kind: input, shape index: {}]   ;;  %s640_s9 = inlined_call_operand.vmem [shape: f32[16,32], index: 9, kind: output, shape index: {}]  }
   0x1   :  { %423 = vmatprep.subr.bf16.mxu1 %v485_v0  ;;  %v465_v1 = vld [vmem:[%s631_s1] sm:$0xff]   ;;  %427 = vmatprep.mubr.msk.bf16.mxu1 %vm486_vm0, %v485_v0  ;;  %v466_v2 = vld [vmem:[%s631_s1 + $0x8] sm:$0xff]   ;;  %v469_v8 = vld [vmem:[%s633_s3 + $0x10] sm:$0xff]  }
   0x2   :  { %443 = vmatprep.subr.bf16.mxu0 %v485_v0  ;;  %447 = vmatprep.mubr.msk.bf16.mxu0 %vm486_vm0, %v485_v0  ;;  %v552_v3 = vld [vmem:[%s632_s0] sm:$0xff]  ;;  %v557_v4 = vld [vmem:[%s632_s0 + $0x8] sm:$0xff]  ;;  %v470_v9 = vld [vmem:[%s633_s3 + $0x18] sm:$0xff]  }
   0x3   :  { %424 = vmatpush3.bf16.msra.mxu1 %v465_v1  ;;  %v35_v5 = vpack.c.bf16 %v557_v4, %v552_v3  ;;  %v467_v6 = vld [vmem:[%s633_s3] sm:$0xff]   ;;  %v468_v7 = vld [vmem:[%s633_s3 + $0x8] sm:$0xff]   ;;  %v475_v50 = vld [vmem:[%s637_s7 + $0x10] sm:$0xff]  }
   0x4   :  { %425 = vmatprep.subr.bf16.mxu1 %v485_v0  ;;  %v387_v10 = vld [vmem:[%s634_s2] ss:$0 sm:$0xff]  ;;  %v472_v37 = vld [vmem:[%s635_s5 + $0x8] sm:$0xff]   ;;  %v476_v51 = vld [vmem:[%s637_s7 + $0x18] sm:$0xff]  }
   0x5   :  { %v471_v36 = vld [vmem:[%s635_s5] sm:$0xff]   ;;  %v474_v49 = vld [vmem:[%s637_s7 + $0x8] sm:$0xff]  }
   0x6   :  { %444 = vmatpush3.bf16.msra.mxu0 %v471_v36  ;;  %v391_v38 = vld [vmem:[%s636_s4] ss:$0 sm:$0xff] }
   0x7   :  { %426 = vmatpush3.bf16.msra.mxu1 %v466_v2  ;;  %445 = vmatprep.subr.bf16.mxu0 %v485_v0  ;;  %v473_v48 = vld [vmem:[%s637_s7] sm:$0xff]  }
   0x8   :  { %431 = vmatprep.subr.bf16.mxu1 %v485_v0  ;;  %v397_v52 = vld [vmem:[%s638_s6] ss:$0 sm:$0xff] }
   0xa   :  { %428 = vmatmul.mubr.msk.bf16.vlgmr.msra.gmra.mrb[0].mxu1 %vm59_vm1, %v35_v5  ;;  %446 = vmatpush3.bf16.msra.mxu0 %v472_v37 }
   0xb   :  { %439 = vmatprep.mubr.msk.bf16.mxu1 %vm486_vm0, %v485_v0  ;;  %432 = vmatpush3.bf16.msra.mxu1 %v467_v6 }
   0xc   :  { %433 = vmatprep.subr.bf16.mxu1 %v485_v0  ;;  %451 = vmatprep.subr.bf16.mxu0 %v485_v0 }
   0xf   :  { %434 = vmatpush3.bf16.msra.mxu1 %v468_v7 }
  0x10   :  { %435 = vmatprep.subr.bf16.mxu1 %v485_v0 }
  0x13   :  { %436 = vmatpush3.bf16.msra.mxu1 %v469_v8 }
  0x14   :  { %437 = vmatprep.subr.bf16.mxu1 %v485_v0 }
  0x17   :  { %438 = vmatpush3.bf16.msra.mxu1 %v470_v9 }
  0xdd   :  { %v97_v11 = vpop.f32.mrb[0].mxu1 }
  0xde   :  { %v98_v12 = vadd.f32 %v387_v10, %v97_v11  ;;  %v429_v13 = vpop.f32.mrb[1].mxu1 }
  0xdf   :  { %v100_v14 = vpop.f32.mrb[2].mxu1 }
  0xe0   :  { %v104_v15 = vmul.f32 %v98_v12, %v98_v12  ;;  %v101_v16 = vadd.f32 %v387_v10, %v100_v14  ;;  %v430_v17 = vpop.f32.mrb[3].mxu1  ;;  %v401_v14 = vld [vmem:[%s639_s8] ss:$0 sm:$0xff] }
  0xe2   :  { %v106_v18 = vmul.f32 %v104_v15, %v98_v12  ;;  %v105_v19 = vmul.f32 %v101_v16, %v101_v16 }
  0xe4   :  { %v108_v20 = vmul.f32 0.044715, %v106_v18  ;;  %v107_v21 = vmul.f32 %v105_v19, %v101_v16 }
  0xe6   :  { %v110_v22 = vadd.f32 %v108_v20, %v98_v12  ;;  %v109_v23 = vmul.f32 0.044715, %v107_v21 }
  0xe8   :  { %v112_v24 = vmul.f32 0.7978846, %v110_v22  ;;  %v111_v25 = vadd.f32 %v109_v23, %v101_v16 }
  0xea   :  { %477 = vtanh.f32 %v112_v24  ;;  %v113_v26 = vmul.f32 0.7978846, %v111_v25 }
  0xec   :  { %479 = vtanh.f32 %v113_v26 }
  0xf4   :  { %v478_v27 = vpop.eup %477 }
  0xf5   :  { %v116_v28 = vadd.f32 1.0, %v478_v27 }
  0xf6   :  { %v480_v29 = vpop.eup %479 }
  0xf7   :  { %v118_v30 = vmul.f32 0.5, %v116_v28  ;;  %v117_v31 = vadd.f32 1.0, %v480_v29 }
  0xf9   :  { %v119_v32 = vmul.f32 0.5, %v117_v31  ;;  %v120_v33 = vmul.f32 %v118_v30, %v98_v12 }
  0xfb   :  { %v121_v34 = vmul.f32 %v119_v32, %v101_v16 }
  0xfd   :  { %v122_v35 = vpack.c.bf16 %v121_v34, %v120_v33 }
  0xff   :  { %440 = vmatmul.mubr.msk.bf16.vlgmr.msra.gmra.mrb[4].mxu1 %vm162_vm2, %v122_v35 }
 0x1d2   :  { %v200_v39 = vpop.f32.mrb[4].mxu1 }
 0x1d3   :  { %v201_v40 = vadd.f32 %v391_v38, %v200_v39  ;;  %v441_v41 = vpop.f32.mrb[5].mxu1 }
 0x1d4   :  { %v203_v42 = vpop.f32.mrb[6].mxu1 }
 0x1d5   :  { %v204_v43 = vadd.f32 %v391_v38, %v203_v42  ;;  %v442_v44 = vpop.f32.mrb[7].mxu1  ;;  %v207_v45 = vadd.f32 %v201_v40, %v552_v3 }
 0x1d7   :  { %v208_v46 = vadd.f32 %v204_v43, %v557_v4 }
 0x1d9   :  { %v209_v47 = vpack.c.bf16 %v208_v46, %v207_v45 }
 0x1db   :  { %448 = vmatmul.mubr.msk.bf16.vlgmr.msra.gmra.mrb[0].mxu0 %vm59_vm1, %v209_v47 }
 0x1dc   :  { %459 = vmatprep.mubr.msk.bf16.mxu0 %vm486_vm0, %v485_v0  ;;  %452 = vmatpush3.bf16.msra.mxu0 %v473_v48 }
 0x1dd   :  { %453 = vmatprep.subr.bf16.mxu0 %v485_v0 }
 0x1e0   :  { %454 = vmatpush3.bf16.msra.mxu0 %v474_v49 }
 0x1e1   :  { %455 = vmatprep.subr.bf16.mxu0 %v485_v0 }
 0x1e4   :  { %456 = vmatpush3.bf16.msra.mxu0 %v475_v50 }
 0x1e5   :  { %457 = vmatprep.subr.bf16.mxu0 %v485_v0 }
 0x1e8   :  { %458 = vmatpush3.bf16.msra.mxu0 %v476_v51 }
 0x2ae   :  { %v270_v53 = vpop.f32.mrb[0].mxu0 }
 0x2af   :  { %v271_v54 = vadd.f32 %v397_v52, %v270_v53  ;;  %v449_v55 = vpop.f32.mrb[1].mxu0 }
 0x2b0   :  { %v273_v56 = vpop.f32.mrb[2].mxu0 }
 0x2b1   :  { %v277_v57 = vmul.f32 %v271_v54, %v271_v54  ;;  %v274_v58 = vadd.f32 %v397_v52, %v273_v56  ;;  %v450_v59 = vpop.f32.mrb[3].mxu0 }
 0x2b3   :  { %v279_v60 = vmul.f32 %v277_v57, %v271_v54  ;;  %v278_v61 = vmul.f32 %v274_v58, %v274_v58 }
 0x2b5   :  { %v281_v62 = vmul.f32 0.044715, %v279_v60  ;;  %v280_v63 = vmul.f32 %v278_v61, %v274_v58 }
 0x2b7   :  { %v283_v0 = vadd.f32 %v281_v62, %v271_v54  ;;  %v282_v1 = vmul.f32 0.044715, %v280_v63 }
 0x2b9   :  { %v285_v2 = vmul.f32 0.7978846, %v283_v0  ;;  %v284_v3 = vadd.f32 %v282_v1, %v274_v58 }
 0x2bb   :  { %481 = vtanh.f32 %v285_v2  ;;  %v286_v4 = vmul.f32 0.7978846, %v284_v3 }
 0x2bd   :  { %483 = vtanh.f32 %v286_v4 }
 0x2c5   :  { %v482_v5 = vpop.eup %481 }
 0x2c6   :  { %v289_v6 = vadd.f32 1.0, %v482_v5 }
 0x2c7   :  { %v484_v7 = vpop.eup %483 }
 0x2c8   :  { %v291_v8 = vmul.f32 0.5, %v289_v6  ;;  %v290_v9 = vadd.f32 1.0, %v484_v7 }
 0x2ca   :  { %v292_v10 = vmul.f32 0.5, %v290_v9  ;;  %v293_v11 = vmul.f32 %v291_v8, %v271_v54 }
 0x2cc   :  { %v294_v12 = vmul.f32 %v292_v10, %v274_v58 }
 0x2ce   :  { %v295_v13 = vpack.c.bf16 %v294_v12, %v293_v11 }
 0x2d0   :  { %460 = vmatmul.mubr.msk.bf16.vlgmr.msra.gmra.mrb[4].mxu0 %vm162_vm2, %v295_v13 }
 0x3a3   :  { %v372_v15 = vpop.f32.mrb[4].mxu0 }
 0x3a4   :  { %v373_v16 = vadd.f32 %v401_v14, %v372_v15  ;;  %v461_v17 = vpop.f32.mrb[5].mxu0 }
 0x3a5   :  { %v375_v18 = vpop.f32.mrb[6].mxu0 }
 0x3a6   :  { %v379_v19 = vadd.f32 %v373_v16, %v207_v45  ;;  %v376_v20 = vadd.f32 %v401_v14, %v375_v18  ;;  %v462_v21 = vpop.f32.mrb[7].mxu0 }
 0x3a8   :  { %381 = vst.msk [vmem:[%s640_s9] sm:$0xff] %vm59_vm1, %v379_v19  ;;  %v380_v22 = vadd.f32 %v376_v20, %v208_v46 }
 0x3aa   :  { %382 = vst.msk [vmem:[%s640_s9 + $0x8] sm:$0xff] %vm59_vm1, %v380_v22 }

</bundles_post_ra>
